<compile_context>
chip_gen: v7x
topology: tpu7x:2x2x1
jax: 0.10.0
libtpu: 0.0.40
codegen_flags: <defaults>
</compile_context>

<pallas_src>
import functools

import jax
import jax.numpy as jnp
from jax.experimental import pallas as pl
from jax.experimental.pallas import tpu as pltpu

_VMEM = pl.BlockSpec(memory_space=pltpu.MemorySpace.VMEM)
_WDTYPE = jnp.bfloat16  # weight storage dtype; MXU-native input, f32 accumulate


def _round_up(x, m):
    return (x + m - 1) // m * m


def _leaky_relu(y):
    return jnp.where(y >= 0.0, y, 0.01 * y)  # PyTorch LeakyReLU default slope


def _relu(y):
    return jnp.maximum(y, 0.0)


def _identity(y):
    return y


_ACTS = {"leakyrelu": _leaky_relu, "relu": _relu, "linear": _identity}


class _SlabPacker:
    """Packs many small 2-D parameters into one [rows, cols] slab so the kernel
    receives them in a SINGLE HBM->VMEM DMA and takes static slices in-kernel."""

    def __init__(self, row_align):
        self._entries = []
        self._rows = 0
        self._cols = 0
        self._row_align = row_align

    def add(self, arr2d):
        arr2d = jnp.asarray(arr2d, jnp.float32)
        r, c = arr2d.shape
        off = self._rows
        self._entries.append((off, arr2d))
        self._rows += _round_up(r, self._row_align)
        self._cols = max(self._cols, c)
        return (off, r, c)  # static metadata, closed over by the kernel

    def finalize(self, dtype):
        rows = _round_up(max(self._rows, 8), 8)
        cols = _round_up(max(self._cols, 128), 128)
        slab = jnp.zeros((rows, cols), jnp.float32)
        for off, arr in self._entries:
            r, c = arr.shape
            slab = slab.at[off:off + r, :c].set(arr)
        return slab.astype(dtype)


class MoEModelPallas:
    """MoE VAE forward pass fused into a single Pallas TPU kernel."""

    def __init__(self, tcr_params, rna_params, joint_params, key):
        self.beta_only = bool(tcr_params.get("beta_only", False))
        self.amount_chains = 1 if self.beta_only else 2

        xdim = rna_params["xdim"]
        hdim = joint_params["hdim"]
        zdim = joint_params["zdim"]
        num_cond = joint_params["num_conditional_labels"]
        cond_dim = joint_params["cond_dim"]
        cond_input = joint_params["cond_input"]
        shared_hidden = list(joint_params["shared_hidden"])
        self.activation = joint_params["activation"]
        use_emb_cond = joint_params.get("use_embedding_for_cond", True)
        num_seq_labels = tcr_params["num_seq_labels"]
        emb_dim = tcr_params["embedding_size"]
        chain_len = tcr_params["max_tcr_length"]

        self.xdim, self.hdim, self.zdim = xdim, hdim, zdim
        self.num_conditional_labels = num_cond
        self.cond_input = cond_input
        self.use_embedding_for_cond = use_emb_cond
        self.num_seq_labels = num_seq_labels
        self.chain_len = chain_len

        if cond_dim > 0 and not use_emb_cond:
            cond_dim = num_cond
        self.cond_dim = cond_dim
        cond_input_dim = cond_dim if cond_input else 0
        self.cond_input_dim = cond_input_dim

        keys = iter(jax.random.split(key, 64))

        wp = _SlabPacker(row_align=16)  # bf16: align to packed sublane pairs
        bp = _SlabPacker(row_align=8)   # f32 biases

        def init_linear(k, fi, fo):
            kw, kb = jax.random.split(k)
            w = jax.random.normal(kw, (fi, fo), jnp.float32) / jnp.sqrt(fi)
            b = 0.01 * jax.random.normal(kb, (fo,), jnp.float32)
            return w, b

        def add_w(w):
            return wp.add(w)

        def add_b(b):
            return bp.add(b.reshape(1, -1))

        def make_mlp(k, dims, split_sizes=None):
            """MLP metadata; first-layer weight optionally row-split so the kernel
            folds input concatenations into split-weight matmuls."""
            layers = []
            for i in range(len(dims) - 1):
                k, sub = jax.random.split(k)
                layers.append(init_linear(sub, dims[i], dims[i + 1]))
            w0, b0 = layers[0]
            if split_sizes is None:
                parts = [add_w(w0)]
            else:
                parts, off = [], 0
                for s in split_sizes:
                    parts.append(add_w(w0[off:off + s]))
                    off += s
            return {"w0": parts, "b0": add_b(b0),
                    "rest": [(add_w(w), add_b(b)) for (w, b) in layers[1:]]}

        def make_tcr_encoder(k, out_dim):
            # TODO(synk): real TransformerEncoder simplified to token embedding +
            # masked mean pool + linear, folded to hist @ (emb @ W).
            k1, k2 = jax.random.split(k)
            emb = jax.random.normal(k1, (num_seq_labels, emb_dim), jnp.float32) * 0.1
            w, b = init_linear(k2, emb_dim, out_dim)
            return {"M": add_w(emb @ w), "b": add_b(b)}

        meta = {}
        chain_out = hdim // self.amount_chains
        if not self.beta_only:
            meta["alpha_enc"] = make_tcr_encoder(next(keys), hdim // 2)
        meta["beta_enc"] = make_tcr_encoder(next(keys), chain_out)

        # TCR "transformer decoders" -> one linear projection; alpha and beta
        # weights concatenated along the output lanes -> one lane-dense matmul.
        dec_out = chain_len * num_seq_labels
        if not self.beta_only:
            wa, ba = init_linear(next(keys), hdim, dec_out)
            wb, bb = init_linear(next(keys), hdim, dec_out)
            w_cat = jnp.concatenate([wa, wb], axis=1)
            b_cat = jnp.concatenate([ba, bb], axis=0)
        else:
            w_cat, b_cat = init_linear(next(keys), hdim, dec_out)
        meta["tcr_dec"] = {"w": add_w(w_cat), "b": add_b(b_cat)}

        rna_hidden = list(rna_params["hidden"])
        meta["rna_enc"] = make_mlp(next(keys), [xdim] + rna_hidden + [hdim])
        meta["rna_dec"] = make_mlp(next(keys), [hdim] + rna_hidden[::-1] + [xdim])

        if cond_dim > 0 and use_emb_cond:
            meta["cond_emb"] = add_w(
                jax.random.normal(next(keys), (num_cond, cond_dim), jnp.float32) * 0.1)

        enc_rna_split = [hdim] + ([cond_input_dim] if cond_input_dim > 0 else [])
        enc_tcr_split = ([hdim // 2, hdim // 2] if not self.beta_only else [hdim]) \
            + ([cond_input_dim] if cond_input_dim > 0 else [])

        meta["rna_vae_enc"] = make_mlp(
            next(keys), [hdim + cond_input_dim] + shared_hidden + [2 * zdim], enc_rna_split)
        meta["tcr_vae_enc"] = make_mlp(
            next(keys), [hdim + cond_input_dim] + shared_hidden + [2 * zdim], enc_tcr_split)

        # rna_vae_decoder + tcr_vae_decoder fused (identical (z|cond) input):
        # layer 0 concatenated on output lanes, later layers block-diagonal.
        dec_dims = [zdim + cond_dim] + shared_hidden[::-1] + [hdim]

        def dec_layers(k):
            out = []
            for i in range(len(dec_dims) - 1):
                k, sub = jax.random.split(k)
                out.append(init_linear(sub, dec_dims[i], dec_dims[i + 1]))
            return out

        la = dec_layers(next(keys))   # rna_vae_decoder params
        lb = dec_layers(next(keys))   # tcr_vae_decoder params
        w0 = jnp.concatenate([la[0][0], lb[0][0]], axis=1)
        b0 = jnp.concatenate([la[0][1], lb[0][1]], axis=0)
        splits = [zdim] + ([cond_dim] if cond_dim > 0 else [])
        parts, off = [], 0
        for s in splits:
            parts.append(add_w(w0[off:off + s]))
            off += s
        rest = []
        for i in range(1, len(dec_dims) - 1):
            wr, br = la[i]
            wt, bt = lb[i]
            di, do = wr.shape
            zblk = jnp.zeros((di, do), jnp.float32)
            w_bd = jnp.concatenate(
                [jnp.concatenate([wr, zblk], axis=1),
                 jnp.concatenate([zblk, wt], axis=1)], axis=0)
            rest.append((add_w(w_bd), add_b(jnp.concatenate([br, bt], axis=0))))
        meta["vae_dec"] = {"w0": parts, "b0": add_b(b0), "rest": rest}

        # dispersion parameter (unused in forward, kept for fidelity)
        self.theta = jax.random.normal(next(keys), (xdim,), jnp.float32)

        self.meta = meta
        self.w_slab = wp.finalize(_WDTYPE)      # ONE bf16 weight slab -> one DMA
        self.b_slab = bp.finalize(jnp.float32)  # ONE f32 bias slab   -> one DMA

    # ------------------------------------------------------------------ kernel
    def _kernel(self, B, has_cond, *refs):
        if has_cond:
            (rna_ref, seq_ref, len_ref, eps_ref, cond_ref,
             wslab_ref, bslab_ref, out_lat, out_rna, out_tcr) = refs
        else:
            (rna_ref, seq_ref, len_ref, eps_ref,
             wslab_ref, bslab_ref, out_lat, out_rna, out_tcr) = refs

        f32, bf16 = jnp.float32, jnp.bfloat16
        S, L, zdim, hdim = self.chain_len, self.num_seq_labels, self.zdim, self.hdim
        act = _ACTS.get(self.activation, _leaky_relu)
        p = self.meta

        def W(m):                       # bf16 weight view -> fed straight to MXU
            off, fi, fo = m
            return wslab_ref[off:off + fi, :fo]

        def Bv(m):                      # f32 bias row
            off, _, fo = m
            return bslab_ref[off:off + 1, :fo]

        def mm(x, wm):                  # bf16 x bf16 matmul, f32 accumulation
            return jnp.dot(x.astype(bf16), W(wm), preferred_element_type=f32)

        def apply_mlp(mlp, xs, hidden_act, out_act):
            # first layer = sum of split-weight matmuls (folds input concat)
            y = Bv(mlp["b0"])
            for wm, x in zip(mlp["w0"], xs):
                y = y + mm(x, wm)
            rest = mlp["rest"]
            if not rest:
                return out_act(y)
            y = hidden_act(y)
            n = len(rest)
            for i, (wm, bm) in enumerate(rest):
                y = mm(y, wm) + Bv(bm)
                y = out_act(y) if i == n - 1 else hidden_act(y)
            return y

        rna = rna_ref[...].astype(f32)          # [B, xdim]
        seq = seq_ref[...]                      # [B, n_chains*S] int32
        lens = len_ref[...]                     # [B, n_chains]   int32
        eps = eps_ref[...]                      # [B, 2*zdim]     f32

        if has_cond:
            cond_idx = cond_ref[...]            # [B, 1] int32
            cond_oh = (jax.lax.broadcasted_iota(
                jnp.int32, (B, self.num_conditional_labels), 1) == cond_idx).astype(f32)
            if self.use_embedding_for_cond:
                cond_vec = mm(cond_oh, p["cond_emb"])
            else:
                cond_vec = cond_oh
        else:
            cond_vec = None

        # ---- TCR chain encoders: masked mean pool + linear == hist @ (emb @ W).
        def chain_encode(tokens, length_col, enc):
            pos = jax.lax.broadcasted_iota(jnp.int32, (B, S), 1)
            mask = (pos < length_col).astype(f32)                       # [B, S]
            lab = jax.lax.broadcasted_iota(jnp.int32, (B, S, L), 2)
            onehot = (tokens[:, :, None] == lab).astype(f32)            # [B, S, L]
            hist = jnp.sum(onehot * mask[:, :, None], axis=1)           # [B, L]
            denom = jnp.maximum(jnp.sum(mask, axis=1, keepdims=True), 1.0)
            hist = hist / denom
            return mm(hist, enc["M"]) + Bv(enc["b"])

        if self.beta_only:
            tcr_feats = [chain_encode(seq, lens[:, 0:1], p["beta_enc"])]
        else:
            tcr_feats = [chain_encode(seq[:, :S], lens[:, 0:1], p["alpha_enc"]),
                         chain_encode(seq[:, S:], lens[:, 1:2], p["beta_enc"])]

        # ---- RNA encoder MLP.
        h_rna = apply_mlp(p["rna_enc"], [rna], act, act)

        # ---- VAE encoders (conditional concat folded into split-weight matmul).
        enc_rna_in = [h_rna]
        enc_tcr_in = list(tcr_feats)
        if has_cond and self.cond_input and self.cond_input_dim > 0:
            enc_rna_in.append(cond_vec)
            enc_tcr_in.append(cond_vec)

        rna_stats = apply_mlp(p["rna_vae_enc"], enc_rna_in, act, _identity)   # [B,2z]
        tcr_stats = apply_mlp(p["tcr_vae_enc"], enc_tcr_in, act, _identity)

        # mu/logvar split kept as plain lane slices (zdim=8 lanes; a roll-based
        # alignment buys nothing at sub-128-lane widths).
        mu_rna, lv_rna = rna_stats[:, :zdim], rna_stats[:, zdim:]
        mu_tcr, lv_tcr = tcr_stats[:, :zdim], tcr_stats[:, zdim:]
        z_rna = mu_rna + eps[:, :zdim] * jnp.exp(0.5 * lv_rna)
        z_tcr = mu_tcr + eps[:, zdim:] * jnp.exp(0.5 * lv_tcr)

        # ---- single lane-dense latent store: [rna_stats | tcr_stats | z_rna | z_tcr]
        out_lat[...] = jnp.concatenate([rna_stats, tcr_stats, z_rna, z_tcr], axis=-1)

        # ---- fused VAE decoders; both latent branches stacked on batch ([2B, ...]).
        z_stack = jnp.concatenate([z_rna, z_tcr], axis=0)                    # [2B, z]
        dec = p["vae_dec"]
        y = mm(z_stack, dec["w0"][0])                                        # [2B, 2*h1]
        if has_cond and self.cond_dim > 0:
            cc = mm(cond_vec, dec["w0"][1])          # cond matmul done ONCE on [B, ...]
            y = y + jnp.concatenate([cc, cc], axis=0)
        y = act(y + Bv(dec["b0"]))
        for wm, bm in dec["rest"]:                   # block-diagonal later layers
            y = act(mm(y, wm) + Bv(bm))
        f_rna = y[:, :hdim]                                                  # [2B, h]
        f_tcr = y[:, hdim:]                                                  # [2B, h]

        out_rna[...] = apply_mlp(p["rna_dec"], [f_rna], act, _identity)      # [2B, xdim]
        out_tcr[...] = mm(f_tcr, p["tcr_dec"]["w"]) + Bv(p["tcr_dec"]["b"])  # [2B, nc*S*L]

    # ----------------------------------------------------------------- forward
    def forward(self, rna, tcr, tcr_len, conditional=None, eps_key=None):
        B = rna.shape[0]
        has_cond = conditional is not None
        if (self.cond_input_dim > 0 or self.cond_dim > 0) and not has_cond:
            raise ValueError("model configured with conditional dims; pass `conditional`")

        # TODO(synk): move eps generation in-kernel (pltpu.prng_seed +
        # pltpu.stateful_normal) to drop this launch + DMA; kept host-side for
        # portability across jax versions.
        eps = jax.random.normal(eps_key, (B, 2 * self.zdim), jnp.float32)
        data = [rna.astype(jnp.float32),
                tcr.astype(jnp.int32),
                tcr_len.astype(jnp.int32),
                eps]
        if has_cond:
            data.append(conditional.reshape(B, 1).astype(jnp.int32))
        data += [self.w_slab, self.b_slab]

        seq_total = self.amount_chains * self.chain_len
        out_shape = (
            jax.ShapeDtypeStruct((B, 6 * self.zdim), jnp.float32),              # packed latents
            jax.ShapeDtypeStruct((2 * B, self.xdim), jnp.float32),              # rna_pred
            jax.ShapeDtypeStruct((2 * B, seq_total * self.num_seq_labels), jnp.float32),
        )

        kernel = functools.partial(self._kernel, B, has_cond)
        # TODO(synk): at realistic batch/xdim add a batch grid axis with per-block
        # BlockSpecs, dimension_semantics=("parallel",) (v7x 2nd TensorCore) and
        # an explicit vmem_limit_bytes in pltpu.CompilerParams (budget against
        # v7x's 64 MiB VMEM); unnecessary at these tiny shapes.
        lat, rna_all, tcr_all = pl.pallas_call(
            kernel,
            out_shape=out_shape,
            in_specs=[_VMEM] * len(data),
            out_specs=(_VMEM, _VMEM, _VMEM),
        )(*data)

        zd = self.zdim
        mu = [lat[:, 0:zd], lat[:, 2 * zd:3 * zd]]
        logvar = [lat[:, zd:2 * zd], lat[:, 3 * zd:4 * zd]]
        z = [lat[:, 4 * zd:5 * zd], lat[:, 5 * zd:6 * zd]]
        rna_pred = [rna_all[:B], rna_all[B:]]
        tcr_pred = [tcr_all[:B].reshape(B, seq_total, self.num_seq_labels),
                    tcr_all[B:].reshape(B, seq_total, self.num_seq_labels)]
        return z, mu, logvar, rna_pred, tcr_pred


# -----------------------------------------------------------------------------
if __name__ == "__main__":
    B = 8
    XDIM, HDIM, ZDIM = 32, 16, 8
    SEQ_PER_CHAIN = 8
    NUM_SEQ_LABELS = 24

    tcr_params = {
        "beta_only": False,
        "num_seq_labels": NUM_SEQ_LABELS,
        "embedding_size": 16,
        "max_tcr_length": SEQ_PER_CHAIN,
    }
    rna_params = {"xdim": XDIM, "hidden": [48]}
    joint_params = {
        "hdim": HDIM,
        "zdim": ZDIM,
        "num_conditional_labels": 4,
        "cond_dim": 4,
        "cond_input": True,
        "shared_hidden": [32],
        "activation": "leakyrelu",
        "dropout": 0.0,
        "batch_norm": False,
        "use_embedding_for_cond": True,
    }

    root = jax.random.PRNGKey(0)
    k_model, k_rna, k_tcr, k_len_a, k_len_b, k_cond, k_eps = jax.random.split(root, 7)

    model = MoEModelPallas(tcr_params, rna_params, joint_params, k_model)

    rna = jax.random.normal(k_rna, (B, XDIM), jnp.float32)
    tcr = jax.random.randint(k_tcr, (B, 2 * SEQ_PER_CHAIN), 0, NUM_SEQ_LABELS, jnp.int32)
    tcr_len = jnp.concatenate(
        [jax.random.randint(k_len_a, (B, 1), 1, SEQ_PER_CHAIN + 1, jnp.int32),
         jax.random.randint(k_len_b, (B, 1), 1, SEQ_PER_CHAIN + 1, jnp.int32)], axis=1)
    conditional = jax.random.randint(k_cond, (B,), 0, 4, jnp.int32)

    out = model.forward(rna, tcr, tcr_len, conditional, eps_key=k_eps)
    jax.tree_util.tree_map(jax.block_until_ready, out)

    # shape / sanity checks
    z, mu, logvar, rna_pred, tcr_pred = out
    assert z[0].shape == (B, ZDIM) and mu[1].shape == (B, ZDIM)
    assert logvar[0].shape == (B, ZDIM)
    assert rna_pred[0].shape == (B, XDIM) and rna_pred[1].shape == (B, XDIM)
    assert tcr_pred[0].shape == (B, 2 * SEQ_PER_CHAIN, NUM_SEQ_LABELS)
    assert all(bool(jnp.all(jnp.isfinite(x))) for x in
               [z[0], z[1], rna_pred[0], rna_pred[1], tcr_pred[0], tcr_pred[1]])

    print("KERNEL_OK")
</pallas_src>

<mosaic_0001>
module attributes {stable_mosaic.version = 11 : i64} {
  func.func @_kernel(%arg0: memref<8x32xf32, #tpu.memory_space<vmem>>, %arg1: memref<8x16xi32, #tpu.memory_space<vmem>>, %arg2: memref<8x2xi32, #tpu.memory_space<vmem>>, %arg3: memref<8x16xf32, #tpu.memory_space<vmem>>, %arg4: memref<8x1xi32, #tpu.memory_space<vmem>>, %arg5: memref<480x384xbf16, #tpu.memory_space<vmem>>, %arg6: memref<104x384xf32, #tpu.memory_space<vmem>>, %arg7: memref<8x48xf32, #tpu.memory_space<vmem>>, %arg8: memref<16x32xf32, #tpu.memory_space<vmem>>, %arg9: memref<16x384xf32, #tpu.memory_space<vmem>>) attributes {dimension_semantics = [], scalar_prefetch = 0 : i64, scratch_operands = 0 : i64, tpu.core_type = #tpu.core_type<tc>} {
    %c0 = arith.constant 0 : index
    %c0_0 = arith.constant 0 : index
    %0 = vector.load %arg0[%c0, %c0_0] : memref<8x32xf32, #tpu.memory_space<vmem>>, vector<8x32xf32>
    %c0_1 = arith.constant 0 : index
    %c0_2 = arith.constant 0 : index
    %1 = vector.load %arg1[%c0_1, %c0_2] : memref<8x16xi32, #tpu.memory_space<vmem>>, vector<8x16xi32>
    %c0_3 = arith.constant 0 : index
    %c0_4 = arith.constant 0 : index
    %2 = vector.load %arg2[%c0_3, %c0_4] : memref<8x2xi32, #tpu.memory_space<vmem>>, vector<8x2xi32>
    %c0_5 = arith.constant 0 : index
    %c0_6 = arith.constant 0 : index
    %3 = vector.load %arg3[%c0_5, %c0_6] : memref<8x16xf32, #tpu.memory_space<vmem>>, vector<8x16xf32>
    %c0_7 = arith.constant 0 : index
    %c0_8 = arith.constant 0 : index
    %4 = vector.load %arg4[%c0_7, %c0_8] : memref<8x1xi32, #tpu.memory_space<vmem>>, vector<8x1xi32>
    %5 = tpu.iota {dimensions = array<i32: 1>} : vector<8x4xi32>
    %6 = vector.broadcast %4 : vector<8x1xi32> to vector<8x4xi32>
    %7 = arith.cmpi eq, %5, %6 : vector<8x4xi32>
    %8 = arith.extui %7 : vector<8x4xi1> to vector<8x4xi32>
    %9 = arith.sitofp %8 : vector<8x4xi32> to vector<8x4xf32>
    %10 = arith.truncf %9 : vector<8x4xf32> to vector<8x4xbf16>
    %c224 = arith.constant 224 : index
    %c0_9 = arith.constant 0 : index
    %11 = vector.load %arg5[%c224, %c0_9] : memref<480x384xbf16, #tpu.memory_space<vmem>>, vector<4x4xbf16>
    %cst = arith.constant dense<0.000000e+00> : vector<8x4xf32>
    %12 = tpu.matmul %10, %11, %cst {dimension_numbers = #tpu.dot_dimension_numbers<[1], [0], [0], [1], [0, 0, 1, 1], [], []>} : vector<8x4xbf16>, vector<4x4xbf16>, vector<8x4xf32> -> vector<8x4xf32>
    %13 = vector.extract_strided_slice %1 {offsets = [0, 0], sizes = [8, 8], strides = [1, 1]} : vector<8x16xi32> to vector<8x8xi32>
    %14 = vector.extract_strided_slice %2 {offsets = [0, 0], sizes = [8, 1], strides = [1, 1]} : vector<8x2xi32> to vector<8x1xi32>
    %15 = tpu.iota {dimensions = array<i32: 1>} : vector<8x8xi32>
    %16 = vector.broadcast %14 : vector<8x1xi32> to vector<8x8xi32>
    %17 = arith.cmpi slt, %15, %16 : vector<8x8xi32>
    %18 = arith.extui %17 : vector<8x8xi1> to vector<8x8xi32>
    %19 = arith.sitofp %18 : vector<8x8xi32> to vector<8x8xf32>
    %20 = tpu.iota {dimensions = array<i32: 2>} : vector<8x8x24xi32>
    %21 = vector.shape_cast %13 : vector<8x8xi32> to vector<8x8x1xi32>
    %22 = vector.broadcast %21 : vector<8x8x1xi32> to vector<8x8x24xi32>
    %23 = arith.cmpi eq, %22, %20 : vector<8x8x24xi32>
    %24 = arith.extui %23 : vector<8x8x24xi1> to vector<8x8x24xi32>
    %25 = arith.sitofp %24 : vector<8x8x24xi32> to vector<8x8x24xf32>
    %26 = vector.shape_cast %19 : vector<8x8xf32> to vector<8x8x1xf32>
    %27 = vector.broadcast %26 : vector<8x8x1xf32> to vector<8x8x24xf32>
    %28 = arith.mulf %25, %27 : vector<8x8x24xf32>
    %cst_10 = arith.constant dense<0.000000e+00> : vector<8x24xf32>
    %29 = vector.multi_reduction <add>, %28, %cst_10 [1] : vector<8x8x24xf32> to vector<8x24xf32>
    %cst_11 = arith.constant dense<0.000000e+00> : vector<8xf32>
    %30 = vector.multi_reduction <add>, %19, %cst_11 [1] : vector<8x8xf32> to vector<8xf32>
    %31 = vector.shape_cast %30 : vector<8xf32> to vector<8x1xf32>
    %cst_12 = arith.constant 1.000000e+00 : f32
    %32 = vector.broadcast %cst_12 : f32 to vector<8x1xf32>
    %33 = arith.maximumf %31, %32 : vector<8x1xf32>
    %34 = vector.broadcast %33 : vector<8x1xf32> to vector<8x24xf32>
    %35 = arith.divf %29, %34 : vector<8x24xf32>
    %36 = arith.truncf %35 : vector<8x24xf32> to vector<8x24xbf16>
    %c0_13 = arith.constant 0 : index
    %c0_14 = arith.constant 0 : index
    %37 = vector.load %arg5[%c0_13, %c0_14] : memref<480x384xbf16, #tpu.memory_space<vmem>>, vector<24x8xbf16>
    %cst_15 = arith.constant dense<0.000000e+00> : vector<8x8xf32>
    %38 = tpu.matmul %36, %37, %cst_15 {dimension_numbers = #tpu.dot_dimension_numbers<[1], [0], [0], [1], [0, 0, 1, 1], [], []>} : vector<8x24xbf16>, vector<24x8xbf16>, vector<8x8xf32> -> vector<8x8xf32>
    %c0_16 = arith.constant 0 : index
    %c0_17 = arith.constant 0 : index
    %39 = vector.load %arg6[%c0_16, %c0_17] : memref<104x384xf32, #tpu.memory_space<vmem>>, vector<1x8xf32>
    %40 = vector.broadcast %39 : vector<1x8xf32> to vector<8x8xf32>
    %41 = arith.addf %38, %40 : vector<8x8xf32>
    %42 = vector.extract_strided_slice %1 {offsets = [0, 8], sizes = [8, 8], strides = [1, 1]} : vector<8x16xi32> to vector<8x8xi32>
    %43 = vector.extract_strided_slice %2 {offsets = [0, 1], sizes = [8, 1], strides = [1, 1]} : vector<8x2xi32> to vector<8x1xi32>
    %44 = tpu.iota {dimensions = array<i32: 1>} : vector<8x8xi32>
    %45 = vector.broadcast %43 : vector<8x1xi32> to vector<8x8xi32>
    %46 = arith.cmpi slt, %44, %45 : vector<8x8xi32>
    %47 = arith.extui %46 : vector<8x8xi1> to vector<8x8xi32>
    %48 = arith.sitofp %47 : vector<8x8xi32> to vector<8x8xf32>
    %49 = tpu.iota {dimensions = array<i32: 2>} : vector<8x8x24xi32>
    %50 = vector.shape_cast %42 : vector<8x8xi32> to vector<8x8x1xi32>
    %51 = vector.broadcast %50 : vector<8x8x1xi32> to vector<8x8x24xi32>
    %52 = arith.cmpi eq, %51, %49 : vector<8x8x24xi32>
    %53 = arith.extui %52 : vector<8x8x24xi1> to vector<8x8x24xi32>
    %54 = arith.sitofp %53 : vector<8x8x24xi32> to vector<8x8x24xf32>
    %55 = vector.shape_cast %48 : vector<8x8xf32> to vector<8x8x1xf32>
    %56 = vector.broadcast %55 : vector<8x8x1xf32> to vector<8x8x24xf32>
    %57 = arith.mulf %54, %56 : vector<8x8x24xf32>
    %cst_18 = arith.constant dense<0.000000e+00> : vector<8x24xf32>
    %58 = vector.multi_reduction <add>, %57, %cst_18 [1] : vector<8x8x24xf32> to vector<8x24xf32>
    %cst_19 = arith.constant dense<0.000000e+00> : vector<8xf32>
    %59 = vector.multi_reduction <add>, %48, %cst_19 [1] : vector<8x8xf32> to vector<8xf32>
    %60 = vector.shape_cast %59 : vector<8xf32> to vector<8x1xf32>
    %cst_20 = arith.constant 1.000000e+00 : f32
    %61 = vector.broadcast %cst_20 : f32 to vector<8x1xf32>
    %62 = arith.maximumf %60, %61 : vector<8x1xf32>
    %63 = vector.broadcast %62 : vector<8x1xf32> to vector<8x24xf32>
    %64 = arith.divf %58, %63 : vector<8x24xf32>
    %65 = arith.truncf %64 : vector<8x24xf32> to vector<8x24xbf16>
    %c32 = arith.constant 32 : index
    %c0_21 = arith.constant 0 : index
    %66 = vector.load %arg5[%c32, %c0_21] : memref<480x384xbf16, #tpu.memory_space<vmem>>, vector<24x8xbf16>
    %cst_22 = arith.constant dense<0.000000e+00> : vector<8x8xf32>
    %67 = tpu.matmul %65, %66, %cst_22 {dimension_numbers = #tpu.dot_dimension_numbers<[1], [0], [0], [1], [0, 0, 1, 1], [], []>} : vector<8x24xbf16>, vector<24x8xbf16>, vector<8x8xf32> -> vector<8x8xf32>
    %c8 = arith.constant 8 : index
    %c0_23 = arith.constant 0 : index
    %68 = vector.load %arg6[%c8, %c0_23] : memref<104x384xf32, #tpu.memory_space<vmem>>, vector<1x8xf32>
    %69 = vector.broadcast %68 : vector<1x8xf32> to vector<8x8xf32>
    %70 = arith.addf %67, %69 : vector<8x8xf32>
    %c24 = arith.constant 24 : index
    %c0_24 = arith.constant 0 : index
    %71 = vector.load %arg6[%c24, %c0_24] : memref<104x384xf32, #tpu.memory_space<vmem>>, vector<1x48xf32>
    %72 = arith.truncf %0 : vector<8x32xf32> to vector<8x32xbf16>
    %c80 = arith.constant 80 : index
    %c0_25 = arith.constant 0 : index
    %73 = vector.load %arg5[%c80, %c0_25] : memref<480x384xbf16, #tpu.memory_space<vmem>>, vector<32x48xbf16>
    %cst_26 = arith.constant dense<0.000000e+00> : vector<8x48xf32>
    %74 = tpu.matmul %72, %73, %cst_26 {dimension_numbers = #tpu.dot_dimension_numbers<[1], [0], [0], [1], [0, 0, 1, 1], [], []>} : vector<8x32xbf16>, vector<32x48xbf16>, vector<8x48xf32> -> vector<8x48xf32>
    %75 = vector.broadcast %71 : vector<1x48xf32> to vector<8x48xf32>
    %76 = arith.addf %75, %74 : vector<8x48xf32>
    %cst_27 = arith.constant 0.000000e+00 : f32
    %77 = vector.broadcast %cst_27 : f32 to vector<8x48xf32>
    %78 = arith.cmpf oge, %76, %77 : vector<8x48xf32>
    %cst_28 = arith.constant 0.00999999977 : f32
    %79 = vector.broadcast %cst_28 : f32 to vector<8x48xf32>
    %80 = arith.mulf %79, %76 : vector<8x48xf32>
    %81 = arith.select %78, %76, %80 : vector<8x48xi1>, vector<8x48xf32>
    %82 = arith.truncf %81 : vector<8x48xf32> to vector<8x48xbf16>
    %c112 = arith.constant 112 : index
    %c0_29 = arith.constant 0 : index
    %83 = vector.load %arg5[%c112, %c0_29] : memref<480x384xbf16, #tpu.memory_space<vmem>>, vector<48x16xbf16>
    %cst_30 = arith.constant dense<0.000000e+00> : vector<8x16xf32>
    %84 = tpu.matmul %82, %83, %cst_30 {dimension_numbers = #tpu.dot_dimension_numbers<[1], [0], [0], [1], [0, 0, 1, 1], [], []>} : vector<8x48xbf16>, vector<48x16xbf16>, vector<8x16xf32> -> vector<8x16xf32>
    %c32_31 = arith.constant 32 : index
    %c0_32 = arith.constant 0 : index
    %85 = vector.load %arg6[%c32_31, %c0_32] : memref<104x384xf32, #tpu.memory_space<vmem>>, vector<1x16xf32>
    %86 = vector.broadcast %85 : vector<1x16xf32> to vector<8x16xf32>
    %87 = arith.addf %84, %86 : vector<8x16xf32>
    %cst_33 = arith.constant 0.000000e+00 : f32
    %88 = vector.broadcast %cst_33 : f32 to vector<8x16xf32>
    %89 = arith.cmpf oge, %87, %88 : vector<8x16xf32>
    %cst_34 = arith.constant 0.00999999977 : f32
    %90 = vector.broadcast %cst_34 : f32 to vector<8x16xf32>
    %91 = arith.mulf %90, %87 : vector<8x16xf32>
    %92 = arith.select %89, %87, %91 : vector<8x16xi1>, vector<8x16xf32>
    %c56 = arith.constant 56 : index
    %c0_35 = arith.constant 0 : index
    %93 = vector.load %arg6[%c56, %c0_35] : memref<104x384xf32, #tpu.memory_space<vmem>>, vector<1x32xf32>
    %94 = arith.truncf %92 : vector<8x16xf32> to vector<8x16xbf16>
    %c240 = arith.constant 240 : index
    %c0_36 = arith.constant 0 : index
    %95 = vector.load %arg5[%c240, %c0_36] : memref<480x384xbf16, #tpu.memory_space<vmem>>, vector<16x32xbf16>
    %cst_37 = arith.constant dense<0.000000e+00> : vector<8x32xf32>
    %96 = tpu.matmul %94, %95, %cst_37 {dimension_numbers = #tpu.dot_dimension_numbers<[1], [0], [0], [1], [0, 0, 1, 1], [], []>} : vector<8x16xbf16>, vector<16x32xbf16>, vector<8x32xf32> -> vector<8x32xf32>
    %97 = vector.broadcast %93 : vector<1x32xf32> to vector<8x32xf32>
    %98 = arith.addf %97, %96 : vector<8x32xf32>
    %99 = arith.truncf %12 : vector<8x4xf32> to vector<8x4xbf16>
    %c256 = arith.constant 256 : index
    %c0_38 = arith.constant 0 : index
    %100 = vector.load %arg5[%c256, %c0_38] : memref<480x384xbf16, #tpu.memory_space<vmem>>, vector<4x32xbf16>
    %cst_39 = arith.constant dense<0.000000e+00> : vector<8x32xf32>
    %101 = tpu.matmul %99, %100, %cst_39 {dimension_numbers = #tpu.dot_dimension_numbers<[1], [0], [0], [1], [0, 0, 1, 1], [], []>} : vector<8x4xbf16>, vector<4x32xbf16>, vector<8x32xf32> -> vector<8x32xf32>
    %102 = arith.addf %98, %101 : vector<8x32xf32>
    %cst_40 = arith.constant 0.000000e+00 : f32
    %103 = vector.broadcast %cst_40 : f32 to vector<8x32xf32>
    %104 = arith.cmpf oge, %102, %103 : vector<8x32xf32>
    %cst_41 = arith.constant 0.00999999977 : f32
    %105 = vector.broadcast %cst_41 : f32 to vector<8x32xf32>
    %106 = arith.mulf %105, %102 : vector<8x32xf32>
    %107 = arith.select %104, %102, %106 : vector<8x32xi1>, vector<8x32xf32>
    %108 = arith.truncf %107 : vector<8x32xf32> to vector<8x32xbf16>
    %c272 = arith.constant 272 : index
    %c0_42 = arith.constant 0 : index
    %109 = vector.load %arg5[%c272, %c0_42] : memref<480x384xbf16, #tpu.memory_space<vmem>>, vector<32x16xbf16>
    %cst_43 = arith.constant dense<0.000000e+00> : vector<8x16xf32>
    %110 = tpu.matmul %108, %109, %cst_43 {dimension_numbers = #tpu.dot_dimension_numbers<[1], [0], [0], [1], [0, 0, 1, 1], [], []>} : vector<8x32xbf16>, vector<32x16xbf16>, vector<8x16xf32> -> vector<8x16xf32>
    %c64 = arith.constant 64 : index
    %c0_44 = arith.constant 0 : index
    %111 = vector.load %arg6[%c64, %c0_44] : memref<104x384xf32, #tpu.memory_space<vmem>>, vector<1x16xf32>
    %112 = vector.broadcast %111 : vector<1x16xf32> to vector<8x16xf32>
    %113 = arith.addf %110, %112 : vector<8x16xf32>
    %c72 = arith.constant 72 : index
    %c0_45 = arith.constant 0 : index
    %114 = vector.load %arg6[%c72, %c0_45] : memref<104x384xf32, #tpu.memory_space<vmem>>, vector<1x32xf32>
    %115 = arith.truncf %41 : vector<8x8xf32> to vector<8x8xbf16>
    %c304 = arith.constant 304 : index
    %c0_46 = arith.constant 0 : index
    %116 = vector.load %arg5[%c304, %c0_46] : memref<480x384xbf16, #tpu.memory_space<vmem>>, vector<8x32xbf16>
    %cst_47 = arith.constant dense<0.000000e+00> : vector<8x32xf32>
    %117 = tpu.matmul %115, %116, %cst_47 {dimension_numbers = #tpu.dot_dimension_numbers<[1], [0], [0], [1], [0, 0, 1, 1], [], []>} : vector<8x8xbf16>, vector<8x32xbf16>, vector<8x32xf32> -> vector<8x32xf32>
    %118 = vector.broadcast %114 : vector<1x32xf32> to vector<8x32xf32>
    %119 = arith.addf %118, %117 : vector<8x32xf32>
    %120 = arith.truncf %70 : vector<8x8xf32> to vector<8x8xbf16>
    %c320 = arith.constant 320 : index
    %c0_48 = arith.constant 0 : index
    %121 = vector.load %arg5[%c320, %c0_48] : memref<480x384xbf16, #tpu.memory_space<vmem>>, vector<8x32xbf16>
    %cst_49 = arith.constant dense<0.000000e+00> : vector<8x32xf32>
    %122 = tpu.matmul %120, %121, %cst_49 {dimension_numbers = #tpu.dot_dimension_numbers<[1], [0], [0], [1], [0, 0, 1, 1], [], []>} : vector<8x8xbf16>, vector<8x32xbf16>, vector<8x32xf32> -> vector<8x32xf32>
    %123 = arith.addf %119, %122 : vector<8x32xf32>
    %124 = arith.truncf %12 : vector<8x4xf32> to vector<8x4xbf16>
    %c336 = arith.constant 336 : index
    %c0_50 = arith.constant 0 : index
    %125 = vector.load %arg5[%c336, %c0_50] : memref<480x384xbf16, #tpu.memory_space<vmem>>, vector<4x32xbf16>
    %cst_51 = arith.constant dense<0.000000e+00> : vector<8x32xf32>
    %126 = tpu.matmul %124, %125, %cst_51 {dimension_numbers = #tpu.dot_dimension_numbers<[1], [0], [0], [1], [0, 0, 1, 1], [], []>} : vector<8x4xbf16>, vector<4x32xbf16>, vector<8x32xf32> -> vector<8x32xf32>
    %127 = arith.addf %123, %126 : vector<8x32xf32>
    %cst_52 = arith.constant 0.000000e+00 : f32
    %128 = vector.broadcast %cst_52 : f32 to vector<8x32xf32>
    %129 = arith.cmpf oge, %127, %128 : vector<8x32xf32>
    %cst_53 = arith.constant 0.00999999977 : f32
    %130 = vector.broadcast %cst_53 : f32 to vector<8x32xf32>
    %131 = arith.mulf %130, %127 : vector<8x32xf32>
    %132 = arith.select %129, %127, %131 : vector<8x32xi1>, vector<8x32xf32>
    %133 = arith.truncf %132 : vector<8x32xf32> to vector<8x32xbf16>
    %c352 = arith.constant 352 : index
    %c0_54 = arith.constant 0 : index
    %134 = vector.load %arg5[%c352, %c0_54] : memref<480x384xbf16, #tpu.memory_space<vmem>>, vector<32x16xbf16>
    %cst_55 = arith.constant dense<0.000000e+00> : vector<8x16xf32>
    %135 = tpu.matmul %133, %134, %cst_55 {dimension_numbers = #tpu.dot_dimension_numbers<[1], [0], [0], [1], [0, 0, 1, 1], [], []>} : vector<8x32xbf16>, vector<32x16xbf16>, vector<8x16xf32> -> vector<8x16xf32>
    %c80_56 = arith.constant 80 : index
    %c0_57 = arith.constant 0 : index
    %136 = vector.load %arg6[%c80_56, %c0_57] : memref<104x384xf32, #tpu.memory_space<vmem>>, vector<1x16xf32>
    %137 = vector.broadcast %136 : vector<1x16xf32> to vector<8x16xf32>
    %138 = arith.addf %135, %137 : vector<8x16xf32>
    %139 = vector.extract_strided_slice %113 {offsets = [0, 0], sizes = [8, 8], strides = [1, 1]} : vector<8x16xf32> to vector<8x8xf32>
    %140 = vector.extract_strided_slice %113 {offsets = [0, 8], sizes = [8, 8], strides = [1, 1]} : vector<8x16xf32> to vector<8x8xf32>
    %141 = vector.extract_strided_slice %138 {offsets = [0, 0], sizes = [8, 8], strides = [1, 1]} : vector<8x16xf32> to vector<8x8xf32>
    %142 = vector.extract_strided_slice %138 {offsets = [0, 8], sizes = [8, 8], strides = [1, 1]} : vector<8x16xf32> to vector<8x8xf32>
    %143 = vector.extract_strided_slice %3 {offsets = [0, 0], sizes = [8, 8], strides = [1, 1]} : vector<8x16xf32> to vector<8x8xf32>
    %cst_58 = arith.constant 5.000000e-01 : f32
    %144 = vector.broadcast %cst_58 : f32 to vector<8x8xf32>
    %145 = arith.mulf %144, %140 : vector<8x8xf32>
    %146 = math.exp %145 : vector<8x8xf32>
    %147 = arith.mulf %143, %146 : vector<8x8xf32>
    %148 = arith.addf %139, %147 : vector<8x8xf32>
    %149 = vector.extract_strided_slice %3 {offsets = [0, 8], sizes = [8, 8], strides = [1, 1]} : vector<8x16xf32> to vector<8x8xf32>
    %cst_59 = arith.constant 5.000000e-01 : f32
    %150 = vector.broadcast %cst_59 : f32 to vector<8x8xf32>
    %151 = arith.mulf %150, %142 : vector<8x8xf32>
    %152 = math.exp %151 : vector<8x8xf32>
    %153 = arith.mulf %149, %152 : vector<8x8xf32>
    %154 = arith.addf %141, %153 : vector<8x8xf32>
    %155 = tpu.concatenate %113, %138, %148, %154 in 1 : vector<8x16xf32>, vector<8x16xf32>, vector<8x8xf32>, vector<8x8xf32> -> vector<8x48xf32>
    %c0_60 = arith.constant 0 : index
    %c0_61 = arith.constant 0 : index
    %156 = vector.load %arg7[%c0_60, %c0_61] : memref<8x48xf32, #tpu.memory_space<vmem>>, vector<8x48xf32>
    tpu.vector_store %arg7[%c0_60, %c0_61], %155 {strides = array<i32>} : memref<8x48xf32, #tpu.memory_space<vmem>>, vector<8x48xf32>,
    %157 = tpu.concatenate %148, %154 in 0 : vector<8x8xf32>, vector<8x8xf32> -> vector<16x8xf32>
    %158 = arith.truncf %157 : vector<16x8xf32> to vector<16x8xbf16>
    %c384 = arith.constant 384 : index
    %c0_62 = arith.constant 0 : index
    %159 = vector.load %arg5[%c384, %c0_62] : memref<480x384xbf16, #tpu.memory_space<vmem>>, vector<8x64xbf16>
    %cst_63 = arith.constant dense<0.000000e+00> : vector<16x64xf32>
    %160 = tpu.matmul %158, %159, %cst_63 {dimension_numbers = #tpu.dot_dimension_numbers<[1], [0], [0], [1], [0, 0, 1, 1], [], []>} : vector<16x8xbf16>, vector<8x64xbf16>, vector<16x64xf32> -> vector<16x64xf32>
    %161 = arith.truncf %12 : vector<8x4xf32> to vector<8x4xbf16>
    %c400 = arith.constant 400 : index
    %c0_64 = arith.constant 0 : index
    %162 = vector.load %arg5[%c400, %c0_64] : memref<480x384xbf16, #tpu.memory_space<vmem>>, vector<4x64xbf16>
    %cst_65 = arith.constant dense<0.000000e+00> : vector<8x64xf32>
    %163 = tpu.matmul %161, %162, %cst_65 {dimension_numbers = #tpu.dot_dimension_numbers<[1], [0], [0], [1], [0, 0, 1, 1], [], []>} : vector<8x4xbf16>, vector<4x64xbf16>, vector<8x64xf32> -> vector<8x64xf32>
    %164 = tpu.concatenate %163, %163 in 0 : vector<8x64xf32>, vector<8x64xf32> -> vector<16x64xf32>
    %165 = arith.addf %160, %164 : vector<16x64xf32>
    %c96 = arith.constant 96 : index
    %c0_66 = arith.constant 0 : index
    %166 = vector.load %arg6[%c96, %c0_66] : memref<104x384xf32, #tpu.memory_space<vmem>>, vector<1x64xf32>
    %167 = vector.broadcast %166 : vector<1x64xf32> to vector<16x64xf32>
    %168 = arith.addf %165, %167 : vector<16x64xf32>
    %cst_67 = arith.constant 0.000000e+00 : f32
    %169 = vector.broadcast %cst_67 : f32 to vector<16x64xf32>
    %170 = arith.cmpf oge, %168, %169 : vector<16x64xf32>
    %cst_68 = arith.constant 0.00999999977 : f32
    %171 = vector.broadcast %cst_68 : f32 to vector<16x64xf32>
    %172 = arith.mulf %171, %168 : vector<16x64xf32>
    %173 = arith.select %170, %168, %172 : vector<16x64xi1>, vector<16x64xf32>
    %174 = arith.truncf %173 : vector<16x64xf32> to vector<16x64xbf16>
    %c416 = arith.constant 416 : index
    %c0_69 = arith.constant 0 : index
    %175 = vector.load %arg5[%c416, %c0_69] : memref<480x384xbf16, #tpu.memory_space<vmem>>, vector<64x32xbf16>
    %cst_70 = arith.constant dense<0.000000e+00> : vector<16x32xf32>
    %176 = tpu.matmul %174, %175, %cst_70 {dimension_numbers = #tpu.dot_dimension_numbers<[1], [0], [0], [1], [0, 0, 1, 1], [], []>} : vector<16x64xbf16>, vector<64x32xbf16>, vector<16x32xf32> -> vector<16x32xf32>
    %c88 = arith.constant 88 : index
    %c0_71 = arith.constant 0 : index
    %177 = vector.load %arg6[%c88, %c0_71] : memref<104x384xf32, #tpu.memory_space<vmem>>, vector<1x32xf32>
    %178 = vector.broadcast %177 : vector<1x32xf32> to vector<16x32xf32>
    %179 = arith.addf %176, %178 : vector<16x32xf32>
    %cst_72 = arith.constant 0.000000e+00 : f32
    %180 = vector.broadcast %cst_72 : f32 to vector<16x32xf32>
    %181 = arith.cmpf oge, %179, %180 : vector<16x32xf32>
    %cst_73 = arith.constant 0.00999999977 : f32
    %182 = vector.broadcast %cst_73 : f32 to vector<16x32xf32>
    %183 = arith.mulf %182, %179 : vector<16x32xf32>
    %184 = arith.select %181, %179, %183 : vector<16x32xi1>, vector<16x32xf32>
    %185 = vector.extract_strided_slice %184 {offsets = [0, 0], sizes = [16, 16], strides = [1, 1]} : vector<16x32xf32> to vector<16x16xf32>
    %186 = vector.extract_strided_slice %184 {offsets = [0, 16], sizes = [16, 16], strides = [1, 1]} : vector<16x32xf32> to vector<16x16xf32>
    %c40 = arith.constant 40 : index
    %c0_74 = arith.constant 0 : index
    %187 = vector.load %arg6[%c40, %c0_74] : memref<104x384xf32, #tpu.memory_space<vmem>>, vector<1x48xf32>
    %188 = arith.truncf %185 : vector<16x16xf32> to vector<16x16xbf16>
    %c160 = arith.constant 160 : index
    %c0_75 = arith.constant 0 : index
    %189 = vector.load %arg5[%c160, %c0_75] : memref<480x384xbf16, #tpu.memory_space<vmem>>, vector<16x48xbf16>
    %cst_76 = arith.constant dense<0.000000e+00> : vector<16x48xf32>
    %190 = tpu.matmul %188, %189, %cst_76 {dimension_numbers = #tpu.dot_dimension_numbers<[1], [0], [0], [1], [0, 0, 1, 1], [], []>} : vector<16x16xbf16>, vector<16x48xbf16>, vector<16x48xf32> -> vector<16x48xf32>
    %191 = vector.broadcast %187 : vector<1x48xf32> to vector<16x48xf32>
    %192 = arith.addf %191, %190 : vector<16x48xf32>
    %cst_77 = arith.constant 0.000000e+00 : f32
    %193 = vector.broadcast %cst_77 : f32 to vector<16x48xf32>
    %194 = arith.cmpf oge, %192, %193 : vector<16x48xf32>
    %cst_78 = arith.constant 0.00999999977 : f32
    %195 = vector.broadcast %cst_78 : f32 to vector<16x48xf32>
    %196 = arith.mulf %195, %192 : vector<16x48xf32>
    %197 = arith.select %194, %192, %196 : vector<16x48xi1>, vector<16x48xf32>
    %198 = arith.truncf %197 : vector<16x48xf32> to vector<16x48xbf16>
    %c176 = arith.constant 176 : index
    %c0_79 = arith.constant 0 : index
    %199 = vector.load %arg5[%c176, %c0_79] : memref<480x384xbf16, #tpu.memory_space<vmem>>, vector<48x32xbf16>
    %cst_80 = arith.constant dense<0.000000e+00> : vector<16x32xf32>
    %200 = tpu.matmul %198, %199, %cst_80 {dimension_numbers = #tpu.dot_dimension_numbers<[1], [0], [0], [1], [0, 0, 1, 1], [], []>} : vector<16x48xbf16>, vector<48x32xbf16>, vector<16x32xf32> -> vector<16x32xf32>
    %c48 = arith.constant 48 : index
    %c0_81 = arith.constant 0 : index
    %201 = vector.load %arg6[%c48, %c0_81] : memref<104x384xf32, #tpu.memory_space<vmem>>, vector<1x32xf32>
    %202 = vector.broadcast %201 : vector<1x32xf32> to vector<16x32xf32>
    %203 = arith.addf %200, %202 : vector<16x32xf32>
    %c0_82 = arith.constant 0 : index
    %c0_83 = arith.constant 0 : index
    %204 = vector.load %arg8[%c0_82, %c0_83] : memref<16x32xf32, #tpu.memory_space<vmem>>, vector<16x32xf32>
    tpu.vector_store %arg8[%c0_82, %c0_83], %203 {strides = array<i32>} : memref<16x32xf32, #tpu.memory_space<vmem>>, vector<16x32xf32>,
    %205 = arith.truncf %186 : vector<16x16xf32> to vector<16x16xbf16>
    %c64_84 = arith.constant 64 : index
    %c0_85 = arith.constant 0 : index
    %206 = vector.load %arg5[%c64_84, %c0_85] : memref<480x384xbf16, #tpu.memory_space<vmem>>, vector<16x384xbf16>
    %cst_86 = arith.constant dense<0.000000e+00> : vector<16x384xf32>
    %207 = tpu.matmul %205, %206, %cst_86 {dimension_numbers = #tpu.dot_dimension_numbers<[1], [0], [0], [1], [0, 0, 1, 1], [], []>} : vector<16x16xbf16>, vector<16x384xbf16>, vector<16x384xf32> -> vector<16x384xf32>
    %c16 = arith.constant 16 : index
    %c0_87 = arith.constant 0 : index
    %208 = vector.load %arg6[%c16, %c0_87] : memref<104x384xf32, #tpu.memory_space<vmem>>, vector<1x384xf32>
    %209 = vector.broadcast %208 : vector<1x384xf32> to vector<16x384xf32>
    %210 = arith.addf %207, %209 : vector<16x384xf32>
    %c0_88 = arith.constant 0 : index
    %c0_89 = arith.constant 0 : index
    %211 = vector.load %arg9[%c0_88, %c0_89] : memref<16x384xf32, #tpu.memory_space<vmem>>, vector<16x384xf32>
    tpu.vector_store %arg9[%c0_88, %c0_89], %210 {strides = array<i32>} : memref<16x384xf32, #tpu.memory_space<vmem>>, vector<16x384xf32>,
    return
  }
}

</mosaic_0001>

<bundles_post_ra>
// kernel: tpu_custom_call.1
= control target key start
LH: loop header
LB: loop body
LE: loop exit
PB: predicated region body
PF: predicated region fallthrough
CT: control target
= control target key end

     0   :  { %15 = vsyncpa [#allocation3], 0  ;;  %s2694_s0 = inlined_call_operand.vmem [shape: f32[8,32], index: 0, kind: input, shape index: {}]   ;;  %s2695_s1 = inlined_call_operand.vmem [shape: s32[8,16], index: 1, kind: input, shape index: {}]   ;;  %s2696_s2 = inlined_call_operand.vmem [shape: s32[8,2], index: 2, kind: input, shape index: {}]   ;;  %s2697_s3 = inlined_call_operand.vmem [shape: f32[8,16], index: 3, kind: input, shape index: {}]   ;;  %s2698_s4 = inlined_call_operand.vmem [shape: s32[8,1], index: 4, kind: input, shape index: {}]   ;;  %s2699_s5 = inlined_call_operand.hbm [shape: bf16[480,384], index: 5, kind: input, shape index: {}]   ;;  %s2700_s6 = inlined_call_operand.hbm [shape: f32[104,384], index: 6, kind: input, shape index: {}]   ;;  %s2701_s7 = inlined_call_operand.hbm [shape: f32[8,48], index: 7, kind: output, shape index: {0}]   ;;  %s2702_s8 = inlined_call_operand.hbm [shape: f32[16,32], index: 8, kind: output, shape index: {1}]   ;;  %s2703_s9 = inlined_call_operand.hbm [shape: f32[16,384], index: 9, kind: output, shape index: {2}]  }
   0x1   :  { %16 = vsyncpa [#allocation6], 0 }
   0x2   :  { %17 = vsyncpa [#allocation4], 0 }
   0x3   :  { %18 = vsyncpa [#allocation9], 0  ;;  %s2301_s30 = smov [#allocation2]   ;;  %s2183_s13 = scalar_lea.hbm %s2699_s5, 11520 }
   0x4   :  { %s34_s10 = sshll.u32 %s2301_s30, 4  ;;  %p2184_p0 = scmp.ne.s32.totalorder %s2699_s5, %s2183_s13  ;;  %s35_s10 = int_to_ptr.vmem [resolvable:$true] %s34_s10 }
   0x5   :  { %p2187_p1 = scmp.lt.u32.totalorder %s2183_s13, %s2699_s5 }
   0x7   :  { %p2189_p2 = pnand %p2187_p1, %p2184_p0 }
   0x9   :  { %2192 = shalt.err (!%p2189_p2)
}
   0xa   :  { %s2193_s18 = scalar_lea.vmem %s35_s10, 11520  ;;  %p2198_p4 = scmp.lt.s32.totalorder %s35_s10, %s35_s10 }
   0xb   :  { %p2194_p3 = scmp.ne.s32.totalorder %s35_s10, %s2193_s18  ;;  %p2199_p5 = scmp.lt.s32.totalorder %s2193_s18, %s2193_s18 }
   0xd   :  { %p2200_p6 = por %p2199_p5, %p2198_p4 }
   0xf   :  { %p2201_p7 = pnand %p2200_p6, %p2194_p3 }
  0x11   :  { %2204 = shalt.err (!%p2201_p7)
}
  0x12   :  { %s2302_s19 = smov 192   ;;  %s2303_s20 = smov 12  }
  0x13   :  { %40 = dma.hbm_to_vmem [thread:$0]  %s2699_s5, 11520, %s35_s10, [#allocation3], %s2302_s19, %s2302_s19, %s2303_s20  }
  0x14   :  { %s2304_s23 = smov [#allocation5]   ;;  %s2205_s27 = scalar_lea.hbm %s2700_s6, 4992 }
  0x15   :  { %s46_s24 = sshll.u32 %s2304_s23, 4  ;;  %p2206_p8 = scmp.ne.s32.totalorder %s2700_s6, %s2205_s27  ;;  %s47_s24 = int_to_ptr.vmem [resolvable:$true] %s46_s24 }
  0x16   :  { %p2209_p9 = scmp.lt.u32.totalorder %s2205_s27, %s2700_s6 }
  0x18   :  { %p2211_p10 = pnand %p2209_p9, %p2206_p8 }
  0x1a   :  { %2214 = shalt.err (!%p2211_p10)
}
  0x1b   :  { %s2215_s12 = scalar_lea.vmem %s47_s24, 4992  ;;  %p2220_p12 = scmp.lt.s32.totalorder %s47_s24, %s47_s24 }
  0x1c   :  { %p2216_p11 = scmp.ne.s32.totalorder %s47_s24, %s2215_s12  ;;  %p2221_p13 = scmp.lt.s32.totalorder %s2215_s12, %s2215_s12 }
  0x1e   :  { %p2222_p0 = por %p2221_p13, %p2220_p12 }
  0x20   :  { %p2223_p1 = pnand %p2222_p0, %p2216_p11 }
  0x22   :  { %2226 = shalt.err (!%p2223_p1)
}
  0x23   :  { %s2305_s5 = smov 384   ;;  %s2306_s10 = smov 24  }
  0x24   :  { %52 = dma.hbm_to_vmem [thread:$0]  %s2700_s6, 4992, %s47_s24, [#allocation6], %s2305_s5, %s2305_s5, %s2306_s10  }
  0x25   :  { %2293 = dma.done.wait [#allocation3], 11520  }
  0x26   :  { %2294 = vsyncadd [#allocation3], 4294955776 }
  0x27   :  { %2295 = dma.done.wait [#allocation6], 4992  }
  0x28   :  { %2296 = vsyncadd [#allocation6], 4294962304  ;;  %v65_v0 = vlaneseq  ;;  %v2307_v1 = vmov 0   ;;  %v2308_v2 = vmov 0.0   ;;  %v62_v6 = vld [vmem:[%s2696_s2] sm:$0xff]  ;;  %v2309_v18 = vmov 1  }
  0x29   :  { %2118 = vset.pattern.permute.xlu0 %v2307_v1  ;;  %1958 = vmatprep.subr.bf16.mxu1 %v2308_v2  ;;  %v61_v7 = vld [vmem:[%s2695_s1] sm:$0xff]  ;;  %vm2704_vm0 = vcmask 64512   ;;  %v2122_v36 = vld [vmem:[#allocation2 + $0x18] ss:$0 sps:$4 sm:$0xff]   ;;  %vm429_vm2 = vcmask 1043456   ;;  %vm2310_vm3 = vmmov 0  }
  0x2a   :  { %v130_v3 = vshrl.u32 %v65_v0, 7  ;;  %2120 = vset.pattern.permute.xlu1 %v2307_v1  ;;  %1952 = vmatprep.subr.bf16.mxu0 %v2308_v2  ;;  %v2426_v19 = vand.u32 127, %v65_v0  ;;  %v2121_v35 = vld [vmem:[#allocation2] ss:$12 sps:$4 sm:$0xff]   ;;  %v431_v37 = vsel %vm429_vm2, %v2122_v36, 0  ;;  %vm273_vm7 = vcmask 195584  }
  0x2b   :  { %124 = vperm.xlu0 %2118, %v62_v6   ;;  %1962 = vmatprep.mubr.msk.bf16.mxu1 %vm2310_vm3, %v2308_v2  ;;  %vm396_vm14 = vcmask 1041409   ;;  %vm399_vm15 = vcmask 1042434   ;;  %s2312_s21 = smov 16   ;;  %s2313_s22 = smov 40  }
  0x2c   :  { %v2402_v4 = vsub.s32 1, %v130_v3  ;;  %v2404_v5 = vsub.s32 2, %v130_v3  ;;  %v2413_v9 = vsub.s32 0, %v130_v3  ;;  %v2415_v10 = vsub.s32 3, %v130_v3  ;;  %1959 = vmatpush3.bf16.msra.mxu1 %v2121_v35  ;;  %1954 = vmatprep.mubr.msk.bf16.mxu0 %vm2310_vm3, %v2308_v2  ;;  %s2315_s23 = smov 32   ;;  %s2316_s24 = smov [#allocation7]  }
  0x2d   :  { %v2418_v12 = vsub.s32 4, %v130_v3  ;;  %v2423_v16 = vsub.s32 5, %v130_v3  ;;  %v2434_v26 = vsub.s32 6, %v130_v3  ;;  %v2437_v28 = vsub.s32 7, %v130_v3  ;;  %1960 = vmatprep.subr.bf16.mxu1 %v2308_v2  ;;  %s1800_s25 = sshll.u32 %s2316_s24, 4  ;;  %s1801_s25 = int_to_ptr.vmem [resolvable:$true] %s1800_s25 }
  0x2e   :  { %v139_v8 = vrot.slane %v61_v7, %v2402_v4  ;;  %v146_v11 = vrot.slane %v61_v7, %v2404_v5  ;;  %v132_v13 = vrot.slane %v61_v7, %v2413_v9  ;;  %v153_v14 = vrot.slane %v61_v7, %v2415_v10  ;;  %s2227_s26 = scalar_lea.vmem %s1801_s25, 128  ;;  %p2232_p3 = scmp.lt.s32.totalorder %s1801_s25, %s1801_s25 }
  0x2f   :  { %v160_v15 = vrot.slane %v61_v7, %v2418_v12  ;;  %v167_v17 = vrot.slane %v61_v7, %v2423_v16  ;;  %2119 = vset.pattern.permute.xlu0 %v2309_v18  ;;  %v174_v27 = vrot.slane %v61_v7, %v2434_v26  ;;  %v181_v29 = vrot.slane %v61_v7, %v2437_v28  ;;  %p2228_p2 = scmp.ne.s32.totalorder %s1801_s25, %s2227_s26  ;;  %p2233_p4 = scmp.lt.s32.totalorder %s2227_s26, %s2227_s26 }
  0x30   :  { %141 = vbcast.lane.b32.xlu1 %v139_v8, 256  ;;  %1961 = vmatpush3.bf16.msra.mxu1 %v431_v37 }
  0x31   :  { %1974 = vmatprep.subr.bf16.mxu1 %v2308_v2  ;;  %p2234_p5 = por %p2233_p4, %p2232_p3 }
  0x33   :  { %p2235_p6 = pnand %p2234_p5, %p2228_p2 }
  0x34   :  { %148 = vbcast.lane.b32.xlu1 %v146_v11, 256 }
  0x38   :  { %134 = vbcast.lane.b32.xlu1 %v132_v13, 256 }
  0x3c   :  { %155 = vbcast.lane.b32.xlu1 %v153_v14, 256 }
  0x40   :  { %162 = vbcast.lane.b32.xlu1 %v160_v15, 256 }
  0x44   :  { %169 = vbcast.lane.b32.xlu1 %v167_v17, 256 }
  0xa2   :  { %v142_v38 = vpop.permute.xlu1 %141 }
  0xa3   :  { %vm186_vm4 = vcmp.eq.s32.totalorder %v142_v38, %v2426_v19 }
  0xa4   :  { %v1845_v45 = vsel %vm186_vm4, 1.0, %v2308_v2  ;;  %vm405_vm4 = vcmask 1044484  }
  0xa6   :  { %v149_v39 = vpop.permute.xlu1 %148 }
  0xa7   :  { %vm187_vm5 = vcmp.eq.s32.totalorder %v149_v39, %v2426_v19 }
  0xa8   :  { %v1846_v47 = vsel %vm187_vm5, 1.0, %v2308_v2  ;;  %vm408_vm5 = vcmask 1045509  }
  0xaa   :  { %v125_v20 = vpop.permute.xlu0 %124  ;;  %v135_v40 = vpop.permute.xlu1 %134 }
  0xab   :  { %vm126_vm1 = vcmp.lt.s32.totalorder %v2426_v19, %v125_v20  ;;  %vm185_vm6 = vcmp.eq.s32.totalorder %v135_v40, %v2426_v19 }
  0xac   :  { %v1843_v21 = vsel %vm126_vm1, 1.0, %v2308_v2  ;;  %v1844_v51 = vsel %vm185_vm6, 1.0, %v2308_v2  ;;  %vm402_vm1 = vcmask 1043459   ;;  %vm411_vm6 = vcmask 1046534  }
  0xad   :  { %v331_v22 = vsel %vm2704_vm0, %v1843_v21, 0.0  ;;  %v219_v23 = vrot.slane %v1843_v21, %v2402_v4  ;;  %v226_v24 = vrot.slane %v1843_v21, %v2404_v5  ;;  %v212_v25 = vrot.slane %v1843_v21, %v2413_v9 }
  0xae   :  { %332 = vadd.xlane.f32.xlu0 %v331_v22  ;;  %v240_v30 = vrot.slane %v1843_v21, %v2418_v12  ;;  %v233_v31 = vrot.slane %v1843_v21, %v2415_v10  ;;  %v247_v32 = vrot.slane %v1843_v21, %v2423_v16  ;;  %v254_v33 = vrot.slane %v1843_v21, %v2434_v26  ;;  %v156_v41 = vpop.permute.xlu1 %155 }
  0xaf   :  { %221 = vbcast.lane.b32.xlu1 %v219_v23, 256  ;;  %v261_v34 = vrot.slane %v1843_v21, %v2437_v28  ;;  %vm188_vm10 = vcmp.eq.s32.totalorder %v156_v41, %v2426_v19 }
  0xb2   :  { %v163_v42 = vpop.permute.xlu1 %162 }
  0xb3   :  { %228 = vbcast.lane.b32.xlu1 %v226_v24, 256  ;;  %vm189_vm8 = vcmp.eq.s32.totalorder %v163_v42, %v2426_v19  ;;  %v1847_v24 = vsel %vm188_vm10, 1.0, %v2308_v2  ;;  %vm79_vm10 = vcmask 1041408  }
  0xb6   :  { %v170_v43 = vpop.permute.xlu1 %169 }
  0xb7   :  { %214 = vbcast.lane.b32.xlu1 %v212_v25, 256  ;;  %vm190_vm9 = vcmp.eq.s32.totalorder %v170_v43, %v2426_v19 }
  0xbb   :  { %176 = vbcast.lane.b32.xlu1 %v174_v27, 256 }
  0xbf   :  { %183 = vbcast.lane.b32.xlu1 %v181_v29, 256 }
  0xc3   :  { %242 = vbcast.lane.b32.xlu1 %v240_v30, 256 }
  0xc4   :  { %235 = vbcast.lane.b32.xlu0 %v233_v31, 256 }
  0xc7   :  { %249 = vbcast.lane.b32.xlu1 %v247_v32, 256 }
  0xc8   :  { %474 = vperm.xlu0 %2119, %v62_v6   ;;  %v1848_v6 = vsel %vm189_vm8, 1.0, %v2308_v2  ;;  %vm414_vm8 = vcmask 1047559  }
  0xcb   :  { %256 = vbcast.lane.b32.xlu1 %v254_v33, 256 }
  0xcc   :  { %485 = vbcast.lane.b32.xlu0 %v139_v8, 264 }
  0xcf   :  { %263 = vbcast.lane.b32.xlu1 %v261_v34, 256 }
  0xd0   :  { %489 = vbcast.lane.b32.xlu0 %v146_v11, 264 }
  0xd4   :  { %481 = vbcast.lane.b32.xlu0 %v132_v13, 264 }
  0xd8   :  { %493 = vbcast.lane.b32.xlu0 %v153_v14, 264  ;;  %v1849_v14 = vsel %vm190_vm9, 1.0, %v2308_v2  ;;  %vm2705_vm9 = vcmask 261120  }
  0xdc   :  { %497 = vbcast.lane.b32.xlu0 %v160_v15, 264 }
  0xe0   :  { %501 = vbcast.lane.b32.xlu0 %v167_v17, 264 }
  0xe4   :  { %505 = vbcast.lane.b32.xlu0 %v174_v27, 264 }
  0xe8   :  { %509 = vbcast.lane.b32.xlu0 %v181_v29, 264 }
 0x121   :  { %v222_v44 = vpop.permute.xlu1 %221 }
 0x122   :  { %v266_v46 = vmul.f32 %v1845_v45, %v222_v44 }
 0x124   :  { %v281_v50 = vsel %vm273_vm7, %v266_v46, 0.0 }
 0x125   :  { %v229_v48 = vpop.permute.xlu1 %228  ;;  %v282_v55 = vrot.slane %v281_v50, 4 }
 0x126   :  { %v267_v49 = vmul.f32 %v1846_v47, %v229_v48 }
 0x127   :  { %v283_v59 = vadd.f32 %v282_v55, %v281_v50 }
 0x128   :  { %v288_v53 = vsel %vm273_vm7, %v267_v49, 0.0 }
 0x129   :  { %v215_v52 = vpop.permute.xlu1 %214  ;;  %v289_v56 = vrot.slane %v288_v53, 4  ;;  %v284_v63 = vrot.slane %v283_v59, 2 }
 0x12a   :  { %v265_v54 = vmul.f32 %v1844_v51, %v215_v52 }
 0x12b   :  { %v290_v60 = vadd.f32 %v289_v56, %v288_v53  ;;  %v285_v11 = vadd.f32 %v284_v63, %v283_v59 }
 0x12c   :  { %v274_v58 = vsel %vm273_vm7, %v265_v54, 0.0 }
 0x12d   :  { %v177_v57 = vpop.permute.xlu1 %176  ;;  %v275_v61 = vrot.slane %v274_v58, 4  ;;  %v291_v0 = vrot.slane %v290_v60, 2  ;;  %v286_v25 = vrot.slane %v285_v11, 1 }
 0x12e   :  { %vm191_vm11 = vcmp.eq.s32.totalorder %v177_v57, %v2426_v19 }
 0x12f   :  { %v276_v3 = vadd.f32 %v275_v61, %v274_v58  ;;  %v292_v15 = vadd.f32 %v291_v0, %v290_v60  ;;  %v1850_v30 = vsel %vm191_vm11, 1.0, %v2308_v2  ;;  %v287_v63 = vadd.f32 %v286_v25, %v285_v11 }
 0x131   :  { %v184_v62 = vpop.permute.xlu1 %183  ;;  %v277_v17 = vrot.slane %v276_v3, 2  ;;  %v293_v31 = vrot.slane %v292_v15, 1 }
 0x132   :  { %vm192_vm12 = vcmp.eq.s32.totalorder %v184_v62, %v2426_v19 }
 0x133   :  { %v278_v32 = vadd.f32 %v277_v17, %v276_v3  ;;  %v1851_v44 = vsel %vm192_vm12, 1.0, %v2308_v2 }
 0x135   :  { %v243_v7 = vpop.permute.xlu1 %242  ;;  %v279_v53 = vrot.slane %v278_v32, 1 }
 0x136   :  { %v269_v8 = vmul.f32 %v1848_v6, %v243_v7 }
 0x137   :  { %v280_v0 = vadd.f32 %v279_v53, %v278_v32 }
 0x138   :  { %v302_v13 = vsel %vm273_vm7, %v269_v8, 0.0 }
 0x139   :  { %v303_v18 = vrot.slane %v302_v13, 4  ;;  %v250_v20 = vpop.permute.xlu1 %249 }
 0x13a   :  { %v270_v21 = vmul.f32 %v1849_v14, %v250_v20 }
 0x13b   :  { %v304_v22 = vadd.f32 %v303_v18, %v302_v13  ;;  %v333_v23 = vpop.xlane.xlu0 %332  ;;  %v294_v13 = vadd.f32 %v293_v31, %v292_v15 }
 0x13c   :  { %v309_v27 = vsel %vm273_vm7, %v270_v21, 0.0  ;;  %v334_v29 = vmax.f32 %v333_v23, 1.0 }
 0x13d   :  { %v310_v33 = vrot.slane %v309_v27, 4  ;;  %v257_v34 = vpop.permute.xlu1 %256  ;;  %v305_v38 = vrot.slane %v304_v22, 2 }
 0x13e   :  { %v336_v35 = vrot.slane %v334_v29, 1  ;;  %v337_v36 = vrot.slane %v334_v29, 2  ;;  %2147 = vrcp.f32 %v334_v29  ;;  %v341_v37 = vrot.slane %v334_v29, 6 }
 0x13f   :  { %v311_v39 = vadd.f32 %v310_v33, %v309_v27  ;;  %v271_v40 = vmul.f32 %v1850_v30, %v257_v34  ;;  %v338_v41 = vrot.slane %v334_v29, 3  ;;  %v236_v42 = vpop.permute.xlu0 %235  ;;  %v342_v45 = vrot.slane %v334_v29, 7 }
 0x140   :  { %2149 = vrcp.f32 %v336_v35  ;;  %v268_v43 = vmul.f32 %v1847_v24, %v236_v42  ;;  %v339_v49 = vrot.slane %v334_v29, 4  ;;  %v306_v54 = vadd.f32 %v305_v38, %v304_v22 }
 0x141   :  { %v312_v46 = vrot.slane %v311_v39, 2  ;;  %2151 = vrcp.f32 %v337_v36  ;;  %v316_v47 = vsel %vm273_vm7, %v271_v40, 0.0  ;;  %v264_v48 = vpop.permute.xlu1 %263  ;;  %v340_v58 = vrot.slane %v334_v29, 5 }
 0x142   :  { %2153 = vrcp.f32 %v341_v37  ;;  %v317_v50 = vrot.slane %v316_v47, 4  ;;  %v295_v51 = vsel %vm273_vm7, %v268_v43, 0.0  ;;  %v272_v52 = vmul.f32 %v1851_v44, %v264_v48 }
 0x143   :  { %2155 = vrcp.f32 %v338_v41  ;;  %v296_v55 = vrot.slane %v295_v51, 4  ;;  %v313_v61 = vadd.f32 %v312_v46, %v311_v39  ;;  %v307_v14 = vrot.slane %v306_v54, 1 }
 0x144   :  { %v318_v56 = vadd.f32 %v317_v50, %v316_v47  ;;  %2157 = vrcp.f32 %v342_v45  ;;  %v323_v57 = vsel %vm273_vm7, %v272_v52, 0.0 }
 0x145   :  { %v297_v59 = vadd.f32 %v296_v55, %v295_v51  ;;  %v324_v60 = vrot.slane %v323_v57, 4  ;;  %2159 = vrcp.f32 %v339_v49  ;;  %v314_v24 = vrot.slane %v313_v61, 1 }
 0x146   :  { %v319_v62 = vrot.slane %v318_v56, 2  ;;  %2161 = vrcp.f32 %v340_v58  ;;  %v308_v42 = vadd.f32 %v307_v14, %v306_v54 }
 0x147   :  { %v298_v3 = vrot.slane %v297_v59, 2  ;;  %v325_v6 = vadd.f32 %v324_v60, %v323_v57  ;;  %v475_v7 = vpop.permute.xlu0 %474  ;;  %v315_v43 = vadd.f32 %v314_v24, %v313_v61 }
 0x148   :  { %v2148_v8 = vpop.eup %2147  ;;  %v320_v17 = vadd.f32 %v319_v62, %v318_v56  ;;  %vm476_vm13 = vcmp.lt.s32.totalorder %v2426_v19, %v475_v7 }
 0x149   :  { %v299_v18 = vadd.f32 %v298_v3, %v297_v59  ;;  %v352_v20 = vmul.f32 %v2148_v8, %v280_v0  ;;  %v326_v21 = vrot.slane %v325_v6, 2  ;;  %v2478_v22 = vsel %vm476_vm13, 1.0, %v2308_v2 }
 0x14a   :  { %v2150_v23 = vpop.eup %2149  ;;  %v321_v27 = vrot.slane %v320_v17, 1  ;;  %v655_v11 = vsel %vm2704_vm0, %v2478_v22, 0.0  ;;  %v545_v25 = vrot.slane %v2478_v22, %v2402_v4  ;;  %v552_v36 = vrot.slane %v2478_v22, %v2404_v5 }
 0x14b   :  { %v2152_v15 = vpop.eup %2151  ;;  %v300_v29 = vrot.slane %v299_v18, 1  ;;  %v354_v30 = vmul.f32 %v2150_v23, %v287_v63  ;;  %v327_v31 = vadd.f32 %v326_v21, %v325_v6  ;;  %656 = vadd.xlane.f32.xlu1 %v655_v11  ;;  %v367_v35 = vpack.c.bf16 %v352_v20, %v352_v20 }
 0x14c   :  { %v2154_v32 = vpop.eup %2153  ;;  %v322_v33 = vadd.f32 %v321_v27, %v320_v17  ;;  %v356_v34 = vmul.f32 %v2152_v15, %v294_v13  ;;  %547 = vbcast.lane.b32.xlu0 %v545_v25, 256  ;;  %v559_v50 = vrot.slane %v2478_v22, %v2415_v10  ;;  %v566_v7 = vrot.slane %v2478_v22, %v2418_v12 }
 0x14d   :  { %v2156_v37 = vpop.eup %2155  ;;  %v301_v38 = vadd.f32 %v300_v29, %v299_v18  ;;  %v368_v39 = vpack.c.bf16 %v354_v30, %v354_v30  ;;  %v328_v40 = vrot.slane %v327_v31, 1  ;;  %v387_v53 = vunpack.c.l.b16 %v367_v35  ;;  %v2123_v30 = vld [vmem:[#allocation2 + $0x78] ss:$12 sps:$4 sm:$0xff]  }
 0x14e   :  { %v2158_v41 = vpop.eup %2157  ;;  %v364_v44 = vmul.f32 %v2154_v32, %v322_v33  ;;  %v369_v45 = vpack.c.bf16 %v356_v34, %v356_v34  ;;  %v538_v12 = vrot.slane %v2478_v22, %v2413_v9  ;;  %v573_v27 = vrot.slane %v2478_v22, %v2423_v16  ;;  %v2124_v16 = vld [vmem:[#allocation2 + $0x90] ss:$12 sps:$4 sm:$0xff]   ;;  %v60_v34 = vld [vmem:[%s2694_s0] sm:$0xff]  ;;  %s2311_s0 = smov 120  }
 0x14f   :  { %v2160_v46 = vpop.eup %2159  ;;  %v358_v47 = vmul.f32 %v2156_v37, %v301_v38  ;;  %v388_v48 = vunpack.c.l.b16 %v368_v39  ;;  %v329_v49 = vadd.f32 %v328_v40, %v327_v31  ;;  %v580_v32 = vrot.slane %v2478_v22, %v2434_v26  ;;  %v64_v26 = vld [vmem:[%s2698_s4] sm:$0xff] }
 0x150   :  { %v2162_v51 = vpop.eup %2161  ;;  %v373_v52 = vpack.c.bf16 %v364_v44, %v364_v44  ;;  %v389_v55 = vunpack.c.l.b16 %v369_v45  ;;  %v360_v56 = vmul.f32 %v2160_v46, %v308_v42  ;;  %554 = vbcast.lane.b32.xlu0 %v552_v36, 256  ;;  %v587_v33 = vrot.slane %v2478_v22, %v2437_v28  ;;  %v74_v22 = vld [vmem:[#allocation2 + $0x150] sm:$0x3]  ;;  %v486_v36 = vpop.permute.xlu0 %485 }
 0x151   :  { %v370_v57 = vpack.c.bf16 %v358_v47, %v358_v47  ;;  %v395_v58 = vrot.slane %v388_v48, 7  ;;  %v366_v59 = vmul.f32 %v2158_v41, %v329_v49  ;;  %v362_v54 = vmul.f32 %v2162_v51, %v315_v43 }
 0x152   :  { %v398_v60 = vrot.slane %v389_v55, 6  ;;  %v371_v61 = vpack.c.bf16 %v360_v56, %v360_v56  ;;  %v393_v6 = vunpack.c.l.b16 %v373_v52  ;;  %v790_v28 = vpack.c.bf16 %v60_v34, %v60_v34 }
 0x153   :  { %v390_v62 = vunpack.c.l.b16 %v370_v57  ;;  %v397_v63 = vsel %vm396_vm14, %v395_v58, %v387_v53  ;;  %v374_v0 = vpack.c.bf16 %v366_v59, %v366_v59  ;;  %v372_v3 = vpack.c.bf16 %v362_v54, %v362_v54 }
 0x154   :  { %v391_v10 = vunpack.c.l.b16 %v371_v61  ;;  %561 = vbcast.lane.b32.xlu0 %v559_v50, 256  ;;  %v400_v17 = vsel %vm399_vm15, %v398_v60, %v397_v63  ;;  %v410_v23 = vrot.slane %v393_v6, 2  ;;  %v81_v35 = vsel %vm79_vm10, %v74_v22, 0  ;;  %v490_v37 = vpop.permute.xlu0 %489 }
 0x155   :  { %v401_v8 = vrot.slane %v390_v62, 5  ;;  %v394_v13 = vunpack.c.l.b16 %v374_v0  ;;  %v392_v14 = vunpack.c.l.b16 %v372_v3  ;;  %1953 = vmatpush3.bf16.msra.mxu0 %v81_v35  ;;  %vm513_vm11 = vcmp.eq.s32.totalorder %v490_v37, %v2426_v19 }
 0x156   :  { %v404_v18 = vrot.slane %v391_v10, 4  ;;  %1966 = vmatprep.subr.bf16.mxu0 %v2308_v2  ;;  %v1858_v46 = vsel %vm513_vm11, 1.0, %v2308_v2  ;;  %vm512_vm13 = vcmp.eq.s32.totalorder %v486_v36, %v2426_v19 }
 0x157   :  { %v403_v20 = vsel %vm402_vm1, %v401_v8, %v400_v17  ;;  %v407_v21 = vrot.slane %v392_v14, 3  ;;  %v413_v11 = vrot.slane %v394_v13, 1  ;;  %v1857_v50 = vsel %vm512_vm13, 1.0, %v2308_v2 }
 0x158   :  { %v406_v24 = vsel %vm405_vm4, %v404_v18, %v403_v20  ;;  %568 = vbcast.lane.b32.xlu0 %v566_v7, 256  ;;  %v482_v38 = vpop.permute.xlu0 %481  ;;  %vm75_vm13 = vcmask 31744  }
 0x159   :  { %v409_v25 = vsel %vm408_vm5, %v407_v21, %v406_v24 }
 0x15a   :  { %v412_v15 = vsel %vm411_vm6, %v410_v23, %v409_v25 }
 0x15b   :  { %v415_v29 = vsel %vm414_vm8, %v413_v11, %v412_v15 }
 0x15c   :  { %v416_v31 = vpack.c.b16 %v415_v29, %v415_v29  ;;  %540 = vbcast.lane.b32.xlu1 %v538_v12, 256  ;;  %575 = vbcast.lane.b32.xlu0 %v573_v27, 256  ;;  %v494_v39 = vpop.permute.xlu0 %493 }
 0x15d   :  { %vm514_vm12 = vcmp.eq.s32.totalorder %v494_v39, %v2426_v19 }
 0x15e   :  { %1963 = vmatmul.mubr.msk.bf16.vlgmr.msra.gmra.mrb[0].mxu1 %vm273_vm7, %v416_v31  ;;  %v1859_v49 = vsel %vm514_vm12, 1.0, %v2308_v2 }
 0x15f   :  { %1975 = vmatpush3.bf16.msra.mxu1 %v2123_v30  ;;  %1978 = vmatprep.mubr.msk.bf16.mxu1 %vm2310_vm3, %v2308_v2 }
 0x160   :  { %1976 = vmatprep.subr.bf16.mxu1 %v2308_v2  ;;  %582 = vbcast.lane.b32.xlu1 %v580_v32, 256  ;;  %v498_v40 = vpop.permute.xlu0 %497 }
 0x161   :  { %589 = vbcast.lane.b32.xlu0 %v587_v33, 256  ;;  %vm515_vm0 = vcmp.eq.s32.totalorder %v498_v40, %v2426_v19 }
 0x162   :  { %v1860_v51 = vsel %vm515_vm0, 1.0, %v2308_v2  ;;  %vm511_vm0 = vcmp.eq.s32.totalorder %v482_v38, %v2426_v19 }
 0x163   :  { %1977 = vmatpush3.bf16.msra.mxu1 %v2124_v16  ;;  %v1856_v32 = vsel %vm511_vm0, 1.0, %v2308_v2 }
 0x164   :  { %68 = vperm.xlu1 %2120, %v64_v26   ;;  %1992 = vmatprep.subr.bf16.mxu1 %v2308_v2  ;;  %v502_v41 = vpop.permute.xlu0 %501 }
 0x166   :  { %1979 = vmatmul.mubr.msk.bf16.vlgmr.msra.gmra.mrb[4].mxu1 %vm2705_vm9, %v790_v28  ;;  %vm516_vm9 = vcmp.eq.s32.totalorder %v502_v41, %v2426_v19 }
 0x167   :  { %1994 = vmatprep.mubr.msk.bf16.mxu1 %vm2310_vm3, %v2308_v2  ;;  %v1861_v58 = vsel %vm516_vm9, 1.0, %v2308_v2 }
 0x168   :  { %v506_v42 = vpop.permute.xlu0 %505 }
 0x169   :  { %vm517_vm9 = vcmp.eq.s32.totalorder %v506_v42, %v2426_v19 }
 0x16a   :  { %v1862_v36 = vsel %vm517_vm9, 1.0, %v2308_v2 }
 0x16c   :  { %v510_v43 = vpop.permute.xlu0 %509 }
 0x16d   :  { %vm518_vm11 = vcmp.eq.s32.totalorder %v510_v43, %v2426_v19 }
 0x16e   :  { %v1863_v6 = vsel %vm518_vm11, 1.0, %v2308_v2 }
 0x1be   :  { %v548_v44 = vpop.permute.xlu0 %547 }
 0x1bf   :  { %v592_v55 = vmul.f32 %v1857_v50, %v548_v44 }
 0x1c1   :  { %v606_v61 = vsel %vm273_vm7, %v592_v55, 0.0 }
 0x1c2   :  { %v555_v45 = vpop.permute.xlu0 %554  ;;  %v607_v10 = vrot.slane %v606_v61, 4 }
 0x1c3   :  { %v593_v48 = vmul.f32 %v1858_v46, %v555_v45 }
 0x1c4   :  { %v608_v20 = vadd.f32 %v607_v10, %v606_v61 }
 0x1c5   :  { %v613_v56 = vsel %vm273_vm7, %v593_v48, 0.0 }
 0x1c6   :  { %v562_v47 = vpop.permute.xlu0 %561  ;;  %v614_v59 = vrot.slane %v613_v56, 4  ;;  %v609_v29 = vrot.slane %v608_v20, 2 }
 0x1c7   :  { %v594_v52 = vmul.f32 %v1859_v49, %v562_v47 }
 0x1c8   :  { %v615_v7 = vadd.f32 %v614_v59, %v613_v56  ;;  %v610_v40 = vadd.f32 %v609_v29, %v608_v20 }
 0x1c9   :  { %v620_v54 = vsel %vm273_vm7, %v594_v52, 0.0 }
 0x1ca   :  { %v569_v53 = vpop.permute.xlu0 %568  ;;  %v621_v0 = vrot.slane %v620_v54, 4  ;;  %v616_v21 = vrot.slane %v615_v7, 2  ;;  %v611_v52 = vrot.slane %v610_v40, 1 }
 0x1cb   :  { %v595_v57 = vmul.f32 %v1860_v51, %v569_v53 }
 0x1cc   :  { %v622_v18 = vadd.f32 %v621_v0, %v620_v54  ;;  %v617_v30 = vadd.f32 %v616_v21, %v615_v7  ;;  %v2125_v7 = vld [vmem:[#allocation2 + $0x30] ss:$12 sps:$4 sm:$0xff]  }
 0x1cd   :  { %v627_v62 = vsel %vm273_vm7, %v595_v57, 0.0 }
 0x1ce   :  { %v576_v60 = vpop.permute.xlu0 %575  ;;  %v628_v8 = vrot.slane %v627_v62, 4  ;;  %v623_v25 = vrot.slane %v622_v18, 2  ;;  %v618_v41 = vrot.slane %v617_v30, 1 }
 0x1cf   :  { %v596_v63 = vmul.f32 %v1861_v58, %v576_v60 }
 0x1d0   :  { %v629_v23 = vadd.f32 %v628_v8, %v627_v62  ;;  %v624_v37 = vadd.f32 %v623_v25, %v622_v18  ;;  %v619_v56 = vadd.f32 %v618_v41, %v617_v30  ;;  %v2126_v18 = vld [vmem:[#allocation2 + $0x48] ss:$0 sps:$4 sm:$0xff]  }
 0x1d1   :  { %v634_v3 = vsel %vm273_vm7, %v596_v63, 0.0 }
 0x1d2   :  { %v635_v14 = vrot.slane %v634_v3, 4  ;;  %v630_v31 = vrot.slane %v629_v23, 2  ;;  %v625_v50 = vrot.slane %v624_v37, 1 }
 0x1d3   :  { %v590_v13 = vpop.permute.xlu0 %589 }
 0x1d4   :  { %v598_v17 = vmul.f32 %v1863_v6, %v590_v13  ;;  %v636_v11 = vadd.f32 %v635_v14, %v634_v3  ;;  %v631_v42 = vadd.f32 %v630_v31, %v629_v23  ;;  %v626_v62 = vadd.f32 %v625_v50, %v624_v37 }
 0x1d5   :  { %v612_v13 = vadd.f32 %v611_v52, %v610_v40 }
 0x1d6   :  { %v648_v24 = vsel %vm273_vm7, %v598_v17, 0.0  ;;  %v637_v35 = vrot.slane %v636_v11, 2  ;;  %v632_v53 = vrot.slane %v631_v42, 1 }
 0x1d7   :  { %v649_v12 = vrot.slane %v648_v24, 4 }
 0x1d8   :  { %v657_v27 = vpop.xlane.xlu1 %656  ;;  %v638_v47 = vadd.f32 %v637_v35, %v636_v11  ;;  %v633_v0 = vadd.f32 %v632_v53, %v631_v42 }
 0x1d9   :  { %v658_v15 = vmax.f32 %v657_v27, 1.0  ;;  %v650_v26 = vadd.f32 %v649_v12, %v648_v24 }
 0x1da   :  { %v639_v54 = vrot.slane %v638_v47, 1 }
 0x1db   :  { %v661_v33 = vrot.slane %v658_v15, 2  ;;  %v662_v16 = vrot.slane %v658_v15, 3  ;;  %v663_v34 = vrot.slane %v658_v15, 4  ;;  %v660_v28 = vrot.slane %v658_v15, 1 }
 0x1dc   :  { %2163 = vrcp.f32 %v658_v15  ;;  %v541_v22 = vpop.permute.xlu1 %540  ;;  %v664_v39 = vrot.slane %v658_v15, 5  ;;  %v651_v44 = vrot.slane %v650_v26, 2  ;;  %v666_v45 = vrot.slane %v658_v15, 7 }
 0x1dd   :  { %2165 = vrcp.f32 %v661_v33  ;;  %v591_v38 = vmul.f32 %v1856_v32, %v541_v22  ;;  %v665_v48 = vrot.slane %v658_v15, 6  ;;  %v640_v24 = vadd.f32 %v639_v54, %v638_v47 }
 0x1de   :  { %2167 = vrcp.f32 %v662_v16  ;;  %v652_v58 = vadd.f32 %v651_v44, %v650_v26 }
 0x1df   :  { %2169 = vrcp.f32 %v663_v34  ;;  %v599_v43 = vsel %vm273_vm7, %v591_v38, 0.0  ;;  %v747_v34 = vsel %vm429_vm2, %v2126_v18, 0 }
 0x1e0   :  { %2171 = vrcp.f32 %v660_v28  ;;  %v600_v46 = vrot.slane %v599_v43, 4  ;;  %v583_v49 = vpop.permute.xlu1 %582  ;;  %v653_v14 = vrot.slane %v652_v58, 1 }
 0x1e1   :  { %2173 = vrcp.f32 %v664_v39  ;;  %v597_v51 = vmul.f32 %v1862_v36, %v583_v49 }
 0x1e2   :  { %v601_v55 = vadd.f32 %v600_v46, %v599_v43  ;;  %2175 = vrcp.f32 %v666_v45  ;;  %v654_v16 = vadd.f32 %v653_v14, %v652_v58  ;;  %v2129_v14 = vld [vmem:[#allocation2 + $0xd8] ss:$12 sps:$4 sm:$0xff]  }
 0x1e3   :  { %v641_v57 = vsel %vm273_vm7, %v597_v51, 0.0  ;;  %2177 = vrcp.f32 %v665_v48 }
 0x1e4   :  { %v602_v59 = vrot.slane %v601_v55, 2  ;;  %v642_v60 = vrot.slane %v641_v57, 4  ;;  %v69_v61 = vpop.permute.xlu1 %68 }
 0x1e5   :  { %vm70_vm12 = vcmp.eq.s32.totalorder %v2426_v19, %v69_v61 }
 0x1e6   :  { %v2164_v63 = vpop.eup %2163  ;;  %v603_v3 = vadd.f32 %v602_v59, %v601_v55  ;;  %v643_v6 = vadd.f32 %v642_v60, %v641_v57  ;;  %v1841_v10 = vsel %vm70_vm12, 1.0, %v2308_v2  ;;  %vm1475_vm12 = vcmask 523264  }
 0x1e7   :  { %v2166_v8 = vpop.eup %2165  ;;  %v73_v17 = vpack.c.bf16 %v1841_v10, %v1841_v10 }
 0x1e8   :  { %v2168_v20 = vpop.eup %2167  ;;  %v680_v21 = vmul.f32 %v2166_v8, %v619_v56  ;;  %v604_v23 = vrot.slane %v603_v3, 1  ;;  %v644_v12 = vrot.slane %v643_v6, 2 }
 0x1e9   :  { %v2170_v27 = vpop.eup %2169  ;;  %v682_v19 = vmul.f32 %v2168_v20, %v626_v62  ;;  %1955 = vmatmul.mubr.msk.bf16.vlgmr.msra.gmra.mrb[0].mxu0 %vm75_vm13, %v73_v17 }
 0x1ea   :  { %v2172_v11 = vpop.eup %2171  ;;  %v684_v25 = vmul.f32 %v2170_v27, %v633_v0  ;;  %v693_v15 = vpack.c.bf16 %v680_v21, %v680_v21  ;;  %v605_v29 = vadd.f32 %v604_v23, %v603_v3  ;;  %v645_v30 = vadd.f32 %v644_v12, %v643_v6  ;;  %1967 = vmatpush3.bf16.msra.mxu0 %v2125_v7  ;;  %v2127_v7 = vld [vmem:[#allocation2 + $0xa8] ss:$12 sps:$4 sm:$0xff]   ;;  %v789_v23 = vld [vmem:[#allocation5 + $0x48] ss:$0 sm:$0xff] }
 0x1eb   :  { %v2174_v31 = vpop.eup %2173  ;;  %v678_v32 = vmul.f32 %v2172_v11, %v612_v13  ;;  %v694_v33 = vpack.c.bf16 %v682_v19, %v682_v19  ;;  %1968 = vmatprep.subr.bf16.mxu0 %v2308_v2  ;;  %1970 = vmatprep.mubr.msk.bf16.mxu0 %vm2310_vm3, %v2308_v2  ;;  %v2128_v13 = vld [vmem:[#allocation2 + $0xc0] ss:$12 sps:$4 sm:$0xff]  }
 0x1ec   :  { %v695_v26 = vpack.c.bf16 %v684_v25, %v684_v25  ;;  %v713_v28 = vunpack.c.l.b16 %v693_v15  ;;  %v676_v22 = vmul.f32 %v2164_v63, %v605_v29  ;;  %v686_v35 = vmul.f32 %v2174_v31, %v640_v24  ;;  %v2176_v36 = vpop.eup %2175 }
 0x1ed   :  { %v692_v37 = vpack.c.bf16 %v678_v32, %v678_v32  ;;  %v714_v38 = vunpack.c.l.b16 %v694_v33  ;;  %v646_v39 = vrot.slane %v645_v30, 1  ;;  %v2178_v40 = vpop.eup %2177  ;;  %v690_v46 = vmul.f32 %v2176_v36, %v654_v16 }
 0x1ee   :  { %v715_v41 = vunpack.c.l.b16 %v695_v26  ;;  %v691_v42 = vpack.c.bf16 %v676_v22, %v676_v22  ;;  %v696_v43 = vpack.c.bf16 %v686_v35, %v686_v35  ;;  %1969 = vmatpush3.bf16.msra.mxu0 %v747_v34  ;;  %v721_v47 = vrot.slane %v713_v28, 6  ;;  %v862_v35 = vld [vmem:[#allocation5 + $0x60] ss:$0 sm:$0xff] }
 0x1ef   :  { %v712_v44 = vunpack.c.l.b16 %v692_v37  ;;  %v647_v45 = vadd.f32 %v646_v39, %v645_v30  ;;  %1982 = vmatprep.subr.bf16.mxu0 %v2308_v2  ;;  %v723_v51 = vrot.slane %v714_v38, 5  ;;  %v698_v53 = vpack.c.bf16 %v690_v46, %v690_v46  ;;  %v2130_v30 = vld [vmem:[#allocation2 + $0x168] ss:$12 sps:$4 sm:$0xff]  }
 0x1f0   :  { %v711_v48 = vunpack.c.l.b16 %v691_v42  ;;  %v716_v49 = vunpack.c.l.b16 %v696_v43  ;;  %v725_v55 = vrot.slane %v715_v41, 4  ;;  %1993 = vmatpush3.bf16.msra.mxu1 %v2130_v30  ;;  %v984_v42 = vld [vmem:[#allocation2 + $0x180] sm:$0x3] }
 0x1f1   :  { %v719_v50 = vrot.slane %v712_v44, 7  ;;  %v688_v52 = vmul.f32 %v2178_v40, %v647_v45  ;;  %v718_v59 = vunpack.c.l.b16 %v698_v53  ;;  %1998 = vmatprep.subr.bf16.mxu1 %v2308_v2  ;;  %v989_v45 = vsel %vm79_vm10, %v984_v42, 0 }
 0x1f2   :  { %v727_v57 = vrot.slane %v716_v49, 3  ;;  %v928_v49 = vld [vmem:[#allocation5 + $0xa8] ss:$0 sm:$0xff] }
 0x1f3   :  { %v720_v56 = vsel %vm396_vm14, %v719_v50, %v711_v48  ;;  %v697_v58 = vpack.c.bf16 %v688_v52, %v688_v52  ;;  %v731_v63 = vrot.slane %v718_v59, 1  ;;  %vm881_vm14 = vcmask 392192   ;;  %v2132_v48 = vld [vmem:[#allocation2 + $0x1b0] ss:$12 sps:$4 sm:$0xff]  }
 0x1f4   :  { %v722_v54 = vsel %vm399_vm15, %v721_v47, %v720_v56  ;;  %v2131_v47 = vld [vmem:[#allocation2 + $0x198] ss:$12 sps:$4 sm:$0xff]  }
 0x1f5   :  { %v724_v60 = vsel %vm402_vm1, %v723_v51, %v722_v54  ;;  %v717_v61 = vunpack.c.l.b16 %v697_v58  ;;  %vm938_vm1 = vcmask 130048  }
 0x1f6   :  { %v726_v62 = vsel %vm405_vm4, %v725_v55, %v724_v60  ;;  %v378_v60 = vld [vmem:[#allocation5] ss:$0 sm:$0xff] }
 0x1f7   :  { %v728_v0 = vsel %vm408_vm5, %v727_v57, %v726_v62  ;;  %v729_v3 = vrot.slane %v717_v61, 2  ;;  %v1098_v57 = vld [vmem:[#allocation2 + $0x1c8] sm:$0xf]  ;;  %vm2706_vm5 = vcmask 261120   ;;  %v1147_v62 = vld [vmem:[#allocation2 + $0x1e0] sm:$0xf] }
 0x1f8   :  { %v1103_v54 = vsel %vm429_vm2, %v1098_v57, 0  ;;  %vm2709_vm0 = vmmov %vm2706_vm5 }
 0x1f9   :  { %v730_v6 = vsel %vm411_vm6, %v729_v3, %v728_v0  ;;  %v1152_v0 = vsel %vm429_vm2, %v1147_v62, 0  ;;  %vm2707_vm6 = vcmask 64512   ;;  %v702_v3 = vld [vmem:[#allocation5 + $0x18] ss:$0 sm:$0xff] }
 0x1fa   :  { %v732_v10 = vsel %vm414_vm8, %v731_v63, %v730_v6  ;;  %vm2708_vm8 = vmmov %vm2707_vm6 }
 0x1fb   :  { %v733_v8 = vpack.c.b16 %v732_v10, %v732_v10  ;;  %v1195_v10 = vld [vmem:[#allocation2 + $0x1f8] sm:$0x3] }
 0x1fd   :  { %1971 = vmatmul.mubr.msk.bf16.vlgmr.msra.gmra.mrb[4].mxu0 %vm273_vm7, %v733_v8  ;;  %v1197_v8 = vsel %vm79_vm10, %v1195_v10, 0 }
 0x1fe   :  { %1983 = vmatpush3.bf16.msra.mxu0 %v2127_v7  ;;  %1988 = vmatprep.mubr.msk.bf16.mxu0 %vm2310_vm3, %v2308_v2 }
 0x1ff   :  { %1984 = vmatprep.subr.bf16.mxu0 %v2308_v2 }
 0x202   :  { %1985 = vmatpush3.bf16.msra.mxu0 %v2128_v13  ;;  %v2133_v13 = vld [vmem:[#allocation2 + $0x210] ss:$12 sps:$4 sm:$0xff]  }
 0x203   :  { %1986 = vmatprep.subr.bf16.mxu0 %v2308_v2 }
 0x206   :  { %1987 = vmatpush3.bf16.msra.mxu0 %v2129_v14  ;;  %v2134_v14 = vld [vmem:[#allocation2 + $0x228] ss:$12 sps:$4 sm:$0xff]  }
 0x207   :  { %2004 = vmatprep.subr.bf16.mxu0 %v2308_v2 }
 0x231   :  { %v2566_v17 = vpop.f32.mrb[0].mxu1 }
 0x232   :  { %v1964_v18 = vpop.f32.mrb[1].mxu1  ;;  %v468_v61 = vadd.f32 %v2566_v17, %v378_v60  ;;  %v1040_v17 = vld [vmem:[#allocation5 + $0xc0] ss:$0 sm:$0xff] }
 0x233   :  { %v470_v20 = vpop.f32.mrb[2].mxu1 }
 0x234   :  { %v1965_v21 = vpop.f32.mrb[3].mxu1  ;;  %v1097_v63 = vpack.c.bf16 %v468_v61, %v468_v61  ;;  %v1432_v61 = vld [vmem:[#allocation5 + $0x120] ss:$0 sm:$0xff] }
 0x239   :  { %v845_v24 = vpop.f32.mrb[4].mxu1 }
 0x23a   :  { %v851_v12 = vadd.f32 %v845_v24, %v789_v23  ;;  %v1980_v27 = vpop.f32.mrb[5].mxu1 }
 0x23b   :  { %v848_v19 = vpop.f32.mrb[6].mxu1 }
 0x23c   :  { %vm852_vm7 = vcmp.ge.f32.partialorder %v851_v12, 0.0  ;;  %v853_v11 = vmul.f32 0.01, %v851_v12  ;;  %v1981_v25 = vpop.f32.mrb[7].mxu1 }
 0x23e   :  { %v854_v15 = vsel %vm852_vm7, %v851_v12, %v853_v11  ;;  %v1096_v11 = vld [vmem:[#allocation5 + $0xd8] ss:$0 sm:$0xff] }
 0x23f   :  { %v855_v29 = vpack.c.bf16 %v854_v15, %v854_v15 }
 0x241   :  { %1989 = vmatmul.mubr.msk.bf16.vlgmr.msra.gmra.mrb[8].mxu0 %vm881_vm14, %v855_v29 }
 0x242   :  { %2008 = vmatprep.mubr.msk.bf16.mxu0 %vm2310_vm3, %v2308_v2  ;;  %2005 = vmatpush3.bf16.msra.mxu0 %v2131_v47 }
 0x243   :  { %2006 = vmatprep.subr.bf16.mxu0 %v2308_v2 }
 0x246   :  { %2007 = vmatpush3.bf16.msra.mxu0 %v2132_v48  ;;  %v63_v48 = vld [vmem:[%s2697_s3] sm:$0xff]  ;;  %s2314_s3 = smov 112  }
 0x247   :  { %2012 = vmatprep.subr.bf16.mxu0 %v2308_v2 }
 0x2bc   :  { %v117_v31 = vpop.f32.mrb[0].mxu0 }
 0x2bd   :  { %v1956_v32 = vpop.f32.mrb[1].mxu0  ;;  %v2577_v46 = vpack.c.bf16 %v117_v31, %v117_v31 }
 0x2be   :  { %v120_v33 = vpop.f32.mrb[2].mxu0 }
 0x2bf   :  { %v1957_v16 = vpop.f32.mrb[3].mxu0  ;;  %v1341_v33 = vld [vmem:[#allocation2 + $0x258] sm:$0x3] }
 0x2d0   :  { %v783_v34 = vpop.f32.mrb[4].mxu0 }
 0x2d1   :  { %v1972_v26 = vpop.f32.mrb[5].mxu0  ;;  %v784_v6 = vadd.f32 %v783_v34, %v702_v3 }
 0x2d2   :  { %v786_v28 = vpop.f32.mrb[6].mxu0  ;;  %v1343_v26 = vsel %vm79_vm10, %v1341_v33, 0  ;;  %v2143_v33 = vld [vmem:[#allocation2 + $0x108] ss:$12 sps:$4 sm:$0xff]  }
 0x2d3   :  { %v1973_v22 = vpop.f32.mrb[7].mxu0  ;;  %v1146_v7 = vpack.c.bf16 %v784_v6, %v784_v6  ;;  %v1340_v28 = vld [vmem:[#allocation2 + $0x240] sm:$0xf] }
 0x2d4   :  { %v1389_v22 = vsel %vm429_vm2, %v1340_v28, 0  ;;  %vm2710_vm2 = vmmov %vm2707_vm6 }
 0x314   :  { %v919_v36 = vpop.f32.mrb[8].mxu0 }
 0x315   :  { %v920_v37 = vadd.f32 %v919_v36, %v862_v35  ;;  %v1990_v38 = vpop.f32.mrb[9].mxu0  ;;  %v1248_v35 = vld [vmem:[#allocation5 + $0xf0] ss:$0 sm:$0xff] }
 0x316   :  { %v922_v39 = vpop.f32.mrb[10].mxu0 }
 0x317   :  { %vm925_vm15 = vcmp.ge.f32.partialorder %v920_v37, 0.0  ;;  %v926_v40 = vmul.f32 0.01, %v920_v37  ;;  %v1991_v41 = vpop.f32.mrb[11].mxu0 }
 0x319   :  { %v927_v43 = vsel %vm925_vm15, %v920_v37, %v926_v40  ;;  %vm1336_vm15 = vcmask 326656  }
 0x31a   :  { %v929_v44 = vpack.c.bf16 %v927_v43, %v927_v43 }
 0x31c   :  { %1995 = vmatmul.mubr.msk.bf16.vlgmr.msra.gmra.mrb[8].mxu1 %vm938_vm1, %v929_v44 }
 0x31d   :  { %1999 = vmatpush3.bf16.msra.mxu1 %v989_v45  ;;  %2000 = vmatprep.mubr.msk.bf16.mxu1 %vm2310_vm3, %v2308_v2 }
 0x31e   :  { %2030 = vmatprep.subr.bf16.mxu1 %v2308_v2 }
 0x328   :  { %2001 = vmatmul.mubr.msk.bf16.vlgmr.msra.gmra.mrb[8].mxu1 %vm75_vm13, %v2577_v46 }
 0x329   :  { %2034 = vmatprep.mubr.msk.bf16.mxu1 %vm2310_vm3, %v2308_v2  ;;  %2031 = vmatpush3.bf16.msra.mxu1 %v2133_v13 }
 0x32a   :  { %2032 = vmatprep.subr.bf16.mxu1 %v2308_v2 }
 0x32d   :  { %2033 = vmatpush3.bf16.msra.mxu1 %v2134_v14 }
 0x32e   :  { %2038 = vmatprep.subr.bf16.mxu1 %v2308_v2 }
 0x3fb   :  { %v1025_v50 = vpop.f32.mrb[8].mxu1 }
 0x3fc   :  { %v2084_v51 = vadd.f32 %v1025_v50, %v928_v49  ;;  %v2002_v52 = vpop.f32.mrb[9].mxu1  ;;  %v2135_v50 = vld [vmem:[#allocation2 + $0x270] ss:$12 sps:$4 sm:$0xff]  }
 0x3fd   :  { %v1028_v53 = vpop.f32.mrb[10].mxu1 }
 0x3fe   :  { %vm1032_vm4 = vcmp.ge.f32.partialorder %v2084_v51, 0.0  ;;  %v1033_v55 = vmul.f32 0.01, %v2084_v51  ;;  %v2003_v56 = vpop.f32.mrb[11].mxu1 }
 0x400   :  { %v1034_v58 = vsel %vm1032_vm4, %v2084_v51, %v1033_v55  ;;  %vm2711_vm4 = vmmov %vm2709_vm0 }
 0x401   :  { %v1035_v59 = vpack.c.bf16 %v1034_v58, %v1034_v58  ;;  %v2136_v58 = vld [vmem:[#allocation2 + $0x288] ss:$12 sps:$4 sm:$0xff]  }
 0x403   :  { %2009 = vmatmul.mubr.msk.bf16.vlgmr.msra.gmra.mrb[12].mxu0 %vm2706_vm5, %v1035_v59  ;;  %v2137_v59 = vld [vmem:[#allocation2 + $0x2a0] ss:$12 sps:$4 sm:$0xff]  }
 0x404   :  { %2013 = vmatpush3.bf16.msra.mxu0 %v1103_v54  ;;  %2014 = vmatprep.mubr.msk.bf16.mxu0 %vm2310_vm3, %v2308_v2  ;;  %v2138_v54 = vld [vmem:[#allocation2 + $0x2b8] ss:$12 sps:$4 sm:$0xff]  }
 0x405   :  { %2018 = vmatprep.subr.bf16.mxu0 %v2308_v2 }
 0x40b   :  { %2015 = vmatmul.mubr.msk.bf16.vlgmr.msra.gmra.mrb[16].mxu0 %vm2707_vm6, %v1097_v63 }
 0x40c   :  { %2019 = vmatpush3.bf16.msra.mxu0 %v1152_v0  ;;  %2020 = vmatprep.mubr.msk.bf16.mxu0 %vm2310_vm3, %v2308_v2 }
 0x40d   :  { %2024 = vmatprep.subr.bf16.mxu0 %v2308_v2 }
 0x417   :  { %2021 = vmatmul.mubr.msk.bf16.vlgmr.msra.gmra.mrb[16].mxu0 %vm2708_vm8, %v1146_v7 }
 0x418   :  { %2025 = vmatpush3.bf16.msra.mxu0 %v1197_v8  ;;  %2026 = vmatprep.mubr.msk.bf16.mxu0 %vm2310_vm3, %v2308_v2 }
 0x419   :  { %2050 = vmatprep.subr.bf16.mxu0 %v2308_v2 }
 0x423   :  { %2027 = vmatmul.mubr.msk.bf16.vlgmr.msra.gmra.mrb[16].mxu0 %vm75_vm13, %v2577_v46 }
 0x424   :  { %2058 = vmatprep.mubr.msk.bf16.mxu0 %vm2310_vm3, %v2308_v2  ;;  %2051 = vmatpush3.bf16.msra.mxu0 %v2135_v50  ;;  %v2146_v50 = vld [vmem:[#allocation2 + $0x68] ss:$12 sps:$4 sm:$0xff]  }
 0x425   :  { %2052 = vmatprep.subr.bf16.mxu0 %v2308_v2 }
 0x428   :  { %2053 = vmatpush3.bf16.msra.mxu0 %v2136_v58 }
 0x429   :  { %2054 = vmatprep.subr.bf16.mxu0 %v2308_v2 }
 0x42c   :  { %2055 = vmatpush3.bf16.msra.mxu0 %v2137_v59 }
 0x42d   :  { %2056 = vmatprep.subr.bf16.mxu0 %v2308_v2 }
 0x430   :  { %2057 = vmatpush3.bf16.msra.mxu0 %v2138_v54 }
 0x4d6   :  { %v1090_v18 = vpop.f32.mrb[12].mxu0 }
 0x4d7   :  { %v2607_v20 = vadd.f32 %v1090_v18, %v1040_v17  ;;  %v2010_v21 = vpop.f32.mrb[13].mxu0 }
 0x4d8   :  { %v1093_v23 = vpop.f32.mrb[14].mxu0  ;;  %v2139_v21 = vld [vmem:[#allocation2 + $0xf0] ss:$12 sps:$4 sm:$0xff]  }
 0x4d9   :  { %v1304_v24 = vmul.f32 0.5, %v2607_v20  ;;  %v2011_v12 = vpop.f32.mrb[15].mxu0  ;;  %v2140_v23 = vld [vmem:[#allocation2 + $0x60] ss:$12 sps:$4 sm:$0xff]  }
 0x4da   :  { %v1450_v12 = vld [vmem:[#allocation5 + $0x108] ss:$0 sm:$0xff] }
 0x4db   :  { %v1305_v27 = vmul.f32 1.442695, %v1304_v24  ;;  %v2142_v24 = vld [vmem:[#allocation2 + $0x64] ss:$12 sps:$4 sm:$0xff]  }
 0x4dc   :  { %1704 = vmatprep.subr.bf16.mxu0 %v2142_v24 }
 0x4dd   :  { %2179 = vpow2.f32 %v1305_v27 }
 0x4e7   :  { %v2180_v19 = vpop.eup %2179 }
 0x4e8   :  { %1308 = vrot.lane.b32.xlu0 %v2180_v19, %s2311_s0 }
 0x4f6   :  { %v1233_v25 = vpop.f32.mrb[16].mxu0 }
 0x4f7   :  { %v2085_v15 = vadd.f32 %v1233_v25, %v1096_v11  ;;  %v2028_v29 = vpop.f32.mrb[17].mxu0 }
 0x4f8   :  { %v1236_v30 = vpop.f32.mrb[18].mxu0 }
 0x4f9   :  { %vm1240_vm11 = vcmp.ge.f32.partialorder %v2085_v15, 0.0  ;;  %v1241_v31 = vmul.f32 0.01, %v2085_v15  ;;  %v2029_v32 = vpop.f32.mrb[19].mxu0 }
 0x4fb   :  { %v1242_v16 = vsel %vm1240_vm11, %v2085_v15, %v1241_v31 }
 0x4fc   :  { %v1243_v34 = vpack.c.bf16 %v1242_v16, %v1242_v16 }
 0x4fe   :  { %2035 = vmatmul.mubr.msk.bf16.vlgmr.msra.gmra.mrb[12].mxu1 %vm2709_vm0, %v1243_v34  ;;  %v2144_v34 = vld [vmem:[#allocation2 + $0x120] ss:$12 sps:$4 sm:$0xff]  }
 0x4ff   :  { %2039 = vmatpush3.bf16.msra.mxu1 %v1343_v26  ;;  %2040 = vmatprep.mubr.msk.bf16.mxu1 %vm2310_vm3, %v2308_v2  ;;  %v2145_v26 = vld [vmem:[#allocation2 + $0x138] ss:$12 sps:$4 sm:$0xff]  }
 0x500   :  { %2044 = vmatprep.subr.bf16.mxu1 %v2308_v2 }
 0x506   :  { %2041 = vmatmul.mubr.msk.bf16.vlgmr.msra.gmra.mrb[16].mxu1 %vm75_vm13, %v2577_v46 }
 0x507   :  { %2046 = vmatprep.mubr.msk.bf16.mxu1 %vm2310_vm3, %v2308_v2  ;;  %2045 = vmatpush3.bf16.msra.mxu1 %v1389_v22 }
 0x508   :  { %2062 = vmatprep.subr.bf16.mxu1 %v2308_v2 }
 0x55a   :  { %v1309_v51 = vpop.permute.xlu0 %1308 }
 0x55b   :  { %v1311_v52 = vmul.f32 %v1309_v51, %v63_v48 }
 0x55d   :  { %v1312_v55 = vadd.f32 %v1311_v52, %v2607_v20  ;;  %v1665_v52 = vld [vmem:[#allocation5 + $0x30] ss:$8 sm:$0x7] }
 0x5d1   :  { %v1298_v36 = vpop.f32.mrb[12].mxu1 }
 0x5d2   :  { %v1299_v37 = vadd.f32 %v1298_v36, %v1248_v35  ;;  %v2036_v38 = vpop.f32.mrb[13].mxu1 }
 0x5d3   :  { %v1301_v39 = vpop.f32.mrb[14].mxu1 }
 0x5d4   :  { %v1313_v40 = vmul.f32 0.5, %v1299_v37  ;;  %v2037_v41 = vpop.f32.mrb[15].mxu1 }
 0x5d6   :  { %v1314_v42 = vmul.f32 1.442695, %v1313_v40  ;;  %v1526_v40 = vld [vmem:[#allocation5 + $0x78] ss:$0 sm:$0xff] }
 0x5d8   :  { %2181 = vpow2.f32 %v1314_v42 }
 0x5d9   :  { %v1379_v43 = vpop.f32.mrb[16].mxu1 }
 0x5da   :  { %v2042_v44 = vpop.f32.mrb[17].mxu1 }
 0x5db   :  { %v1382_v45 = vpop.f32.mrb[18].mxu1 }
 0x5dc   :  { %v2043_v46 = vpop.f32.mrb[19].mxu1 }
 0x5e2   :  { %v2182_v47 = vpop.eup %2181 }
 0x5e3   :  { %v1316_v49 = vmul.f32 %v2182_v47, %v63_v48 }
 0x5e5   :  { %1318 = vrot.lane.b32.xlu1 %v1316_v49, %s2311_s0 }
 0x5e9   :  { %1323 = vrot.lane.b32.xlu1 %v1299_v37, %s2312_s21 }
 0x657   :  { %v1319_v53 = vpop.permute.xlu1 %1318 }
 0x658   :  { %v1321_v56 = vadd.f32 %v1319_v53, %v1299_v37 }
 0x65a   :  { %v1339_v57 = vpack.c.bf16 %v1321_v56, %v1312_v55  ;;  %1331 = vrot.lane.b32.xlu1 %v1321_v56, %s2313_s22 }
 0x65b   :  { %v1324_v22 = vpop.permute.xlu1 %1323 }
 0x65c   :  { %2047 = vmatmul.mubr.msk.bf16.vlgmr.msra.gmra.mrb[20].mxu1 %vm2710_vm2, %v1339_v57  ;;  %v1334_v35 = vsel %vm938_vm1, %v2607_v20, %v1324_v22 }
 0x65d   :  { %2064 = vmatprep.mubr.msk.bf16.mxu1 %vm2310_vm3, %v2308_v2  ;;  %2063 = vmatpush3.bf16.msra.mxu1 %v2139_v21 }
 0x65e   :  { %2068 = vmatprep.subr.bf16.mxu1 %v2308_v2 }
 0x6cc   :  { %v1332_v37 = vpop.permute.xlu1 %1331 }
 0x72f   :  { %v1425_v60 = vpop.f32.mrb[20].mxu1 }
 0x730   :  { %v1426_v62 = vadd.f32 %v1425_v60, %v1379_v43  ;;  %v2048_v63 = vpop.f32.mrb[21].mxu1 }
 0x731   :  { %v1428_v0 = vpop.f32.mrb[22].mxu1 }
 0x732   :  { %v1433_v3 = vadd.f32 %v1432_v61, %v1426_v62  ;;  %v1429_v6 = vadd.f32 %v1428_v0, %v1379_v43  ;;  %v2049_v10 = vpop.f32.mrb[23].mxu1 }
 0x734   :  { %v1437_v7 = vmul.f32 0.01, %v1433_v3  ;;  %v1434_v8 = vadd.f32 %v1432_v61, %v1429_v6  ;;  %vm1435_vm10 = vcmp.ge.f32.partialorder %v1433_v3, 0.0 }
 0x736   :  { %vm1436_vm9 = vcmp.ge.f32.partialorder %v1434_v8, 0.0  ;;  %v1438_v13 = vmul.f32 0.01, %v1434_v8  ;;  %v1439_v14 = vsel %vm1435_vm10, %v1433_v3, %v1437_v7 }
 0x738   :  { %v1440_v17 = vsel %vm1436_vm9, %v1434_v8, %v1438_v13 }
 0x739   :  { %v1441_v18 = vpack.c.bf16 %v1440_v17, %v1439_v14 }
 0x73b   :  { %2059 = vmatmul.mubr.msk.bf16.vlgmr.msra.gmra.mrb[20].mxu0 %vm1475_vm12, %v1441_v18 }
 0x73c   :  { %1736 = vmatprep.mubr.bf16.mxu0 %v2307_v1  ;;  %1705 = vmatpush1.bf16.msra.mxu0 %v2140_v23 }
 0x80e   :  { %v1513_v27 = vpop.f32.mrb[20].mxu0 }
 0x80f   :  { %v1514_v19 = vadd.f32 %v1513_v27, %v1450_v12  ;;  %v2060_v11 = vpop.f32.mrb[21].mxu0 }
 0x810   :  { %v1516_v25 = vpop.f32.mrb[22].mxu0 }
 0x811   :  { %v1522_v15 = vmul.f32 0.01, %v1514_v19  ;;  %v1517_v29 = vadd.f32 %v1516_v25, %v1450_v12  ;;  %v2061_v30 = vpop.f32.mrb[23].mxu0  ;;  %vm1520_vm13 = vcmp.ge.f32.partialorder %v1514_v19, 0.0 }
 0x813   :  { %vm1521_vm7 = vcmp.ge.f32.partialorder %v1517_v29, 0.0  ;;  %v1523_v31 = vmul.f32 0.01, %v1517_v29  ;;  %v1524_v1 = vsel %vm1520_vm13, %v1514_v19, %v1522_v15 }
 0x815   :  { %v1525_v32 = vsel %vm1521_vm7, %v1517_v29, %v1523_v31 }
 0x816   :  { %v1527_v16 = vpack.c.bf16 %v1525_v32, %v1524_v1 }
 0x818   :  { %1683 = vrot.lane.b32.xlu0 %v1527_v16, %s2314_s3  ;;  %2065 = vmatmul.mubr.msk.bf16.vlgmr.msra.gmra.mrb[24].mxu1 %vm938_vm1, %v1527_v16 }
 0x819   :  { %2069 = vmatpush3.bf16.msra.mxu1 %v2143_v33  ;;  %2074 = vmatprep.mubr.msk.bf16.mxu1 %vm2310_vm3, %v2308_v2 }
 0x81a   :  { %2070 = vmatprep.subr.bf16.mxu1 %v2308_v2 }
 0x81c   :  { %1327 = vrot.lane.b32.xlu0 %v1312_v55, %s2315_s23 }
 0x81d   :  { %2071 = vmatpush3.bf16.msra.mxu1 %v2144_v34 }
 0x81e   :  { %2072 = vmatprep.subr.bf16.mxu1 %v2308_v2 }
 0x821   :  { %2073 = vmatpush3.bf16.msra.mxu1 %v2145_v26 }
 0x822   :  { %2078 = vmatprep.subr.bf16.mxu1 %v2308_v2 }
 0x88a   :  { %v1684_v28 = vpop.permute.xlu0 %1683 }
 0x88b   :  { %1902 = vmatmul.mubr.msk.bf16.vlgmr.msra.gmra.mrb[24].mxu0 %vm938_vm1, %v1684_v28 }
 0x88e   :  { %v1328_v36 = vpop.permute.xlu0 %1327 }
 0x88f   :  { %v1335_v38 = vsel %vm2711_vm4, %v1334_v35, %v1328_v36 }
 0x890   :  { %v1337_v39 = vsel %vm1336_vm15, %v1335_v38, %v1332_v37 }
 0x891   :  { %1338 = vst.msk [vmem:[#allocation7] sm:$0xff] %vm881_vm14, %v1337_v39 }
 0x8eb   :  { %v1573_v41 = vpop.f32.mrb[24].mxu1 }
 0x8ec   :  { %v1580_v42 = vadd.f32 %v1573_v41, %v1526_v40  ;;  %v2066_v43 = vpop.f32.mrb[25].mxu1 }
 0x8ed   :  { %v1576_v44 = vpop.f32.mrb[26].mxu1 }
 0x8ee   :  { %v1584_v45 = vmul.f32 0.01, %v1580_v42  ;;  %v1581_v46 = vadd.f32 %v1576_v44, %v1526_v40  ;;  %v2067_v47 = vpop.f32.mrb[27].mxu1  ;;  %vm1582_vm5 = vcmp.ge.f32.partialorder %v1580_v42, 0.0 }
 0x8f0   :  { %vm1583_vm6 = vcmp.ge.f32.partialorder %v1581_v46, 0.0  ;;  %v1585_v48 = vmul.f32 0.01, %v1581_v46  ;;  %v1586_v49 = vsel %vm1582_vm5, %v1580_v42, %v1584_v45 }
 0x8f2   :  { %v1587_v20 = vsel %vm1583_vm6, %v1581_v46, %v1585_v48 }
 0x8f3   :  { %v1588_v51 = vpack.c.bf16 %v1587_v20, %v1586_v49 }
 0x8f5   :  { %2075 = vmatmul.mubr.msk.bf16.vlgmr.msra.gmra.mrb[28].mxu1 %vm881_vm14, %v1588_v51 }
 0x8f6   :  { %2079 = vmatpush3.bf16.msra.mxu1 %v2146_v50  ;;  %2080 = vmatprep.mubr.msk.bf16.mxu1 %vm2310_vm3, %v2308_v2 }
 0x8fd   :  { %2081 = vmatmul.mubr.msk.bf16.vlgmr.msra.gmra.mrb[32].mxu1 %vm938_vm1, %v1684_v28 }
 0x8fe   :  { %2238 = shalt.err (!%p2235_p6)
}
 0x8ff   :  { %s2239_s29 = scalar_lea.hbm %s2701_s7, 128 }
 0x900   :  { %p2240_p7 = scmp.ne.s32.totalorder %s2701_s7, %s2239_s29  ;;  %p2243_p8 = scmp.lt.u32.totalorder %s2239_s29, %s2701_s7 }
 0x902   :  { %p2245_p9 = pnand %p2243_p8, %p2240_p7 }
 0x904   :  { %2248 = shalt.err (!%p2245_p9)
}
 0x905   :  { %1803 = dma.vmem_to_hbm [thread:$0]  %s1801_s25, 128, %s2701_s7, [#allocation4]   ;;  %v1670_v2 = vrot.slane %v1665_v52, %v2413_v9  ;;  %v1674_v53 = vrot.slane %v1665_v52, %v2402_v4  ;;  %v1595_v62 = vld [vmem:[#allocation5 + $0x90] ss:$0 sm:$0xff]  ;;  %vm2712_vm3 = vmmov %vm2709_vm0  ;;  %v1678_v10 = vrot.slane %v1665_v52, %v2404_v5 }
 0x906   :  { %s2317_s15 = smov [#allocation8]   ;;  %vm2713_vm14 = vmmov %vm2709_vm0 }
 0x907   :  { %s1809_s7 = sshll.u32 %s2317_s15, 4  ;;  %s1810_s7 = int_to_ptr.vmem [resolvable:$true] %s1809_s7 }
 0x908   :  { %s2249_s16 = scalar_lea.vmem %s1810_s7, 256  ;;  %p2254_p11 = scmp.lt.s32.totalorder %s1810_s7, %s1810_s7 }
 0x909   :  { %p2250_p10 = scmp.ne.s32.totalorder %s1810_s7, %s2249_s16  ;;  %p2255_p12 = scmp.lt.s32.totalorder %s2249_s16, %s2249_s16 }
 0x90b   :  { %p2256_p13 = por %p2255_p12, %p2254_p11 }
 0x90d   :  { %p2257_p0 = pnand %p2256_p13, %p2250_p10 }
 0x95e   :  { %v1738_v55 = vpop.f32.mrb[24].mxu0 }
 0x95f   :  { %v1739_v56 = vadd.f32 %v1738_v55, %v1670_v2  ;;  %v1740_v57 = vpop.f32.mrb[25].mxu0 }
 0x960   :  { %v1741_v58 = vadd.f32 %v1740_v57, %v1674_v53  ;;  %v1742_v59 = vpop.f32.mrb[26].mxu0 }
 0x961   :  { %1788 = vst [vmem:[#allocation10] sm:$0xff] %v1739_v56  ;;  %v1743_v54 = vadd.f32 %v1742_v59, %v1670_v2  ;;  %v1744_v60 = vpop.f32.mrb[27].mxu0 }
 0x962   :  { %1789 = vst [vmem:[#allocation10 + $0x8] sm:$0xff] %v1741_v58  ;;  %v1745_v61 = vadd.f32 %v1744_v60, %v1674_v53 }
 0x963   :  { %1791 = vst [vmem:[#allocation10 + $0x18] sm:$0xff] %v1743_v54 }
 0x964   :  { %1792 = vst [vmem:[#allocation10 + $0x20] sm:$0xff] %v1745_v61 }
 0x9c8   :  { %v1651_v63 = vpop.f32.mrb[28].mxu1 }
 0x9c9   :  { %v1652_v0 = vadd.f32 %v1651_v63, %v1595_v62  ;;  %v2076_v9 = vpop.f32.mrb[29].mxu1 }
 0x9ca   :  { %v1654_v3 = vpop.f32.mrb[30].mxu1 }
 0x9cb   :  { %1658 = vst.msk [vmem:[#allocation8] sm:$0xff] %vm2712_vm3, %v1652_v0  ;;  %v1655_v4 = vadd.f32 %v1654_v3, %v1595_v62  ;;  %v2077_v6 = vpop.f32.mrb[31].mxu1 }
 0x9cd   :  { %1659 = vst.msk [vmem:[#allocation8 + $0x8] sm:$0xff] %vm2713_vm14, %v1655_v4 }
 0x9ce   :  { %2260 = shalt.err (!%p2257_p0)
}
 0x9cf   :  { %s2261_s2 = scalar_lea.hbm %s2702_s8, 256 }
 0x9d0   :  { %p2262_p1 = scmp.ne.s32.totalorder %s2702_s8, %s2261_s2  ;;  %p2265_p2 = scmp.lt.u32.totalorder %s2261_s2, %s2702_s8 }
 0x9d2   :  { %p2267_p3 = pnand %p2265_p2, %p2262_p1 }
 0x9d4   :  { %2270 = shalt.err (!%p2267_p3)
}
 0x9d5   :  { %s2318_s20 = smov 128   ;;  %s2319_s21 = smov 8   ;;  %v1781_v5 = vpop.f32.mrb[32].mxu1 }
 0x9d6   :  { %1815 = dma.vmem_to_hbm [thread:$0]  %s1810_s7, 256, %s2702_s8, [#allocation9], %s2318_s20, %s2318_s20, %s2319_s21   ;;  %v1782_v7 = vadd.f32 %v1781_v5, %v1678_v10  ;;  %v2082_v8 = vpop.f32.mrb[33].mxu1 }
 0x9d7   :  { %s2320_s23 = smov [#allocation10]   ;;  %v1784_v13 = vpop.f32.mrb[34].mxu1 }
 0x9d8   :  { %s1821_s24 = sshll.u32 %s2320_s23, 4  ;;  %1790 = vst [vmem:[#allocation10 + $0x10] sm:$0xff] %v1782_v7  ;;  %v1785_v14 = vadd.f32 %v1784_v13, %v1678_v10  ;;  %v2083_v17 = vpop.f32.mrb[35].mxu1  ;;  %s1822_s24 = int_to_ptr.vmem [resolvable:$true] %s1821_s24 }
 0x9d9   :  { %s2271_s25 = scalar_lea.vmem %s1822_s24, 768  ;;  %p2276_p5 = scmp.lt.s32.totalorder %s1822_s24, %s1822_s24 }
 0x9da   :  { %1793 = vst [vmem:[#allocation10 + $0x28] sm:$0xff] %v1785_v14  ;;  %p2272_p4 = scmp.ne.s32.totalorder %s1822_s24, %s2271_s25  ;;  %p2277_p6 = scmp.lt.s32.totalorder %s2271_s25, %s2271_s25 }
 0x9dc   :  { %p2278_p7 = por %p2277_p6, %p2276_p5 }
 0x9de   :  { %p2279_p8 = pnand %p2278_p7, %p2272_p4 }
 0x9e0   :  { %2282 = shalt.err (!%p2279_p8)
}
 0x9e1   :  { %s2283_s27 = scalar_lea.hbm %s2703_s9, 768 }
 0x9e2   :  { %p2284_p9 = scmp.ne.s32.totalorder %s2703_s9, %s2283_s27  ;;  %p2287_p10 = scmp.lt.u32.totalorder %s2283_s27, %s2703_s9 }
 0x9e4   :  { %p2289_p11 = pnand %p2287_p10, %p2284_p9 }
 0x9e6   :  { %2292 = shalt.err (!%p2289_p11)
}
 0x9e7   :  { %1827 = dma.vmem_to_hbm [thread:$0]  %s1822_s24, 768, %s2703_s9, [#allocation9], %s2305_s5, %s2305_s5, %s2306_s10  }
 0x9e8   :  { %2297 = dma.done.wait [#allocation4], 128  }
 0x9e9   :  { %2298 = vsyncadd [#allocation4], 4294967168 }
 0x9ea   :  { %2299 = dma.done.wait [#allocation9], 1024  }
 0x9eb   :  { %2300 = vsyncadd [#allocation9], 4294966272 }
 0x9ec   :  { %1837 = vsyncpa [#allocation3], 1 }
 0x9ed   :  { %1838 = vsyncpa [#allocation6], 1 }
 0x9ee   :  { %1839 = vsyncpa [#allocation4], 1 }
 0x9ef   :  { %1840 = vsyncpa [#allocation9], 1 }

</bundles_post_ra>
